<compile_context>
chip_gen: v5e
topology: v5e:2x2
jax: 0.10.0
libtpu: 0.0.40
codegen_flags: <defaults>
</compile_context>

<pallas_src>
import jax
import jax.numpy as jnp
from jax.experimental import pallas as pl
from jax.experimental.pallas import tpu as pltpu


# ----------------------------------------------------------------------------
# Parameter / buffer construction (plain JAX glue, runs once at init)
# ----------------------------------------------------------------------------
def _make_knot_grid(in_features, grid_size, spline_degree, alpha):
    """Replicates the torch buffers `knot` (G+2,) and `grid` (in, 13)."""
    spline_order = spline_degree + 1
    eps = 1e-3
    p = jnp.linspace(alpha / 2.0, 1.0 - alpha / 2.0, grid_size + 2)
    # Normal(0,1).icdf(p) == sqrt(2) * erfinv(2p - 1)
    knot = jnp.sqrt(2.0) * jax.scipy.special.erfinv(2.0 * p - 1.0)
    ramp = jnp.linspace(0.0, eps * spline_order, spline_order)
    grid_row = jnp.concatenate([knot[0] - ramp[::-1], knot[1:-1], knot[-1] + ramp])
    grid = jnp.tile(grid_row[None, :], (in_features, 1))  # (in, 13)
    return knot.astype(jnp.float32), grid.astype(jnp.float32)


def init_dkan_linear(key, in_features, out_features, grid_size=5,
                     spline_degree=3, alpha=0.01, pad_out_to=None):
    spline_order = spline_degree + 1
    n_bases = grid_size + spline_order + 2            # == 11 for defaults
    knot, grid = _make_knot_grid(in_features, grid_size, spline_degree, alpha)
    grid_row = grid[0]                                 # identical for every feature
    n_grid = grid_row.shape[0]                         # 13
    n_seg = n_grid - 1                                 # 12 degree-0 intervals == feat segments

    k1, k2, k3, k4 = jax.random.split(key, 4)
    b_res = 1.0 / jnp.sqrt(in_features)
    w_res = jax.random.uniform(k1, (out_features, in_features), jnp.float32,
                               -b_res, b_res)
    bias_res = jax.random.uniform(k2, (out_features,), jnp.float32, -b_res, b_res)

    in_bsp = in_features * n_bases
    b_bsp = 1.0 / jnp.sqrt(in_bsp)
    w_bsp = jax.random.uniform(k3, (out_features, in_bsp), jnp.float32,
                               -b_bsp, b_bsp)
    bias_bsp = jax.random.uniform(k4, (out_features,), jnp.float32, -b_bsp, b_bsp)

    # Fused kernel layout:
    #   feat columns : [ silu(x) (Fin) | basis_0 (Fin) | ... | basis_{10} (Fin) ]
    #   W_full rows  : [ w_res.T       | w_bsp reordered basis-major, feat-minor ]
    # with W_full[Fin + j*Fin + f, o] == w_bsp[o, f*n_bases + j].
    wbsp_bmajor = jnp.transpose(
        w_bsp.reshape(out_features, in_features, n_bases), (2, 1, 0)
    ).reshape(n_bases * in_features, out_features)
    w_full = jnp.concatenate([w_res.T, wbsp_bmajor], axis=0)
    bias = (bias_res + bias_bsp).reshape(1, out_features)

    # Optionally zero-pad output columns so the final store is a lane-dense vst.
    out_padded = out_features
    if pad_out_to is not None and out_features % pad_out_to:
        out_padded = ((out_features + pad_out_to - 1) // pad_out_to) * pad_out_to
        w_full = jnp.pad(w_full, ((0, 0), (0, out_padded - out_features)))
        bias = jnp.pad(bias, ((0, 0), (0, out_padded - out_features)))
    w_full = w_full.astype(jnp.bfloat16)               # bf16 MXU operands, f32 accumulate

    # Wide per-segment constant pack: rows = [g_lo, g_hi, a_1 .. a_degree],
    # each knot / reciprocal-denominator repeated Fin times per lane segment.
    g = grid_row
    rows = [jnp.repeat(g[:n_seg], in_features),        # g[j]
            jnp.repeat(g[1:], in_features)]            # g[j+1]
    for k in range(1, spline_degree + 1):
        inv = 1.0 / (g[k:] - g[:-k])                   # 1/(g[j+k]-g[j]), j <= 12-k
        inv = jnp.concatenate(
            [inv, jnp.zeros((n_seg - inv.shape[0],), jnp.float32)])  # finite dummies
        rows.append(jnp.repeat(inv, in_features))
    cpack = jnp.stack(rows).astype(jnp.float32)        # (2+degree, 12*Fin)

    meta = dict(in_features=in_features, degree=spline_degree, n_seg=n_seg,
                knot0=float(knot[0]), knot_last=float(knot[-1]))

    return dict(
        # kernel-side params
        w_full=w_full, bias=bias, cpack=cpack, meta=meta,
        out_features=out_features,
        # raw torch-layout params for the pure-JAX reference
        w_res=w_res, b_res=bias_res, w_bsp=w_bsp, b_bsp=bias_bsp,
        grid=grid, knot0=float(knot[0]), knot_last=float(knot[-1]),
        spline_degree=spline_degree, n_bases=n_bases,
    )


# ----------------------------------------------------------------------------
# Fused Pallas kernel: the whole DKAN forward
# ----------------------------------------------------------------------------
def _seg_shift(v, fin):
    """Bring segment j+1's value to segment j's lanes (circular, one Fin segment).

    Unambiguous spelling of pltpu.roll(v, -fin, axis=1); lowers to lane rotates on
    the XLU slot. The wrapped top segment only feeds already-dead slab segments.
    """
    return jnp.concatenate([v[:, fin:], v[:, :fin]], axis=1)


def _dkan_layer_compute(x, w_ref, b_ref, c_ref, meta):
    """One DKANLinear layer on in-register/VMEM values."""
    fin = meta["in_features"]
    n_seg = meta["n_seg"]
    degree = meta["degree"]
    n_spline = n_seg - degree                     # 9 cubic B-spline bases

    # Residual branch input: SiLU(x). exp on the EUP; approx reciprocal (EUP) keeps
    # the VALU free of the multi-op exact divide.
    silu = x * pl.reciprocal(1.0 + jnp.exp(-x), approx=True)

    # BatchNorm1d(affine=False), training mode: two-pass biased batch stats.
    mean = jnp.mean(x, axis=0, keepdims=True)
    xc = x - mean
    var = jnp.mean(xc * xc, axis=0, keepdims=True)
    xn = xc * jax.lax.rsqrt(var + 1e-5)

    # --- Lane-dense spline slab: segment j (Fin lanes) <-> basis index j ---------
    cpk = c_ref[...]                              # (2+degree, 12*Fin) constants
    g_lo = cpk[0:1, :]                            # g[j]   per segment
    g_hi = cpk[1:2, :]                            # g[j+1] per segment
    xw = jnp.concatenate([xn] * n_seg, axis=1)    # (B, 12*Fin) xn replicated per segment
    dlo = xw - g_lo                               # xn - g[j], reused by every stage

    # Degree-0 indicators as step-function differences (one wide compare pair).
    slab = (dlo >= 0.0).astype(jnp.float32) - (xw >= g_hi).astype(jnp.float32)

    # Cox-de Boor, shared-weight form: B_j^k = t_j*B_j + (1 - t_{j+1})*B_{j+1},
    # t_j = (xn - g[j]) / (g[j+k] - g[j])  -> one wide mul + FMA chain per stage.
    for k in range(1, degree + 1):
        t = dlo * cpk[1 + k:2 + k, :]
        slab = t * slab + (1.0 - _seg_shift(t, fin)) * _seg_shift(slab, fin)

    # Boundary ReLU bases.
    relu_lo = jnp.maximum(meta["knot0"] - xn, 0.0)
    relu_hi = jnp.maximum(xn - meta["knot_last"], 0.0)

    # Lane-dense feature slab -> ONE MXU dot covering residual + bspline branches.
    # bf16 operands (weights pre-cast at init), f32 accumulation.
    feat = jnp.concatenate(
        [silu, slab[:, :n_spline * fin], relu_lo, relu_hi], axis=1)
    return jnp.dot(feat.astype(jnp.bfloat16), w_ref[...],
                   preferred_element_type=jnp.float32) + b_ref[...]


def _make_dkan_kernel(metas):
    n_layers = len(metas)

    def kernel(*refs):
        # refs = (x_ref, w0, b0, c0, w1, b1, c1, ..., out_ref)
        x = refs[0][...]
        out_ref = refs[-1]
        for i in range(n_layers):
            w_ref, b_ref, c_ref = refs[1 + 3 * i: 4 + 3 * i]
            x = _dkan_layer_compute(x, w_ref, b_ref, c_ref, metas[i])
        out_ref[...] = x

    return kernel


def dkan_forward(x, layer_params):
    """Fused forward for the whole DKAN stack in one pallas_call."""
    batch = x.shape[0]
    pad_fout = layer_params[-1]["w_full"].shape[1]     # last layer padded to 128 lanes
    fout = layer_params[-1]["out_features"]
    metas = [p["meta"] for p in layer_params]

    args = [x]
    for p in layer_params:
        args += [p["w_full"], p["bias"], p["cpack"]]

    vmem = pl.BlockSpec(memory_space=pltpu.MemorySpace.VMEM)
    y = pl.pallas_call(
        _make_dkan_kernel(metas),
        out_shape=jax.ShapeDtypeStruct((batch, pad_fout), jnp.float32),
        in_specs=[vmem] * len(args),
        out_specs=vmem,
    )(*args)
    return y[:, :fout] if pad_fout != fout else y


# ----------------------------------------------------------------------------
# Pure-JAX reference (mirrors the torch forward, for verification)
# ----------------------------------------------------------------------------
def _dkan_linear_ref(x, p):
    silu = x * jax.nn.sigmoid(x)
    res = silu @ p["w_res"].T + p["b_res"]
    mean = jnp.mean(x, axis=0, keepdims=True)
    var = jnp.mean((x - mean) ** 2, axis=0, keepdims=True)
    xn = (x - mean) / jnp.sqrt(var + 1e-5)
    grid = p["grid"]                                      # (Fin, 13)
    xe = xn[:, :, None]
    bases = ((xe >= grid[:, :-1]) & (xe < grid[:, 1:])).astype(x.dtype)
    for k in range(1, p["spline_degree"] + 1):
        bases = ((xe - grid[:, :-(k + 1)]) /
                 (grid[:, k:-1] - grid[:, :-(k + 1)]) * bases[:, :, :-1]
                 + (grid[:, k + 1:] - xe) /
                 (grid[:, k + 1:] - grid[:, 1:-k]) * bases[:, :, 1:])
    out1 = jnp.maximum(p["knot0"] - xe, 0.0)
    out2 = jnp.maximum(xe - p["knot_last"], 0.0)
    bases = jnp.concatenate([bases, out1, out2], axis=2)  # (B, Fin, 11)
    bsp = bases.reshape(x.shape[0], -1) @ p["w_bsp"].T + p["b_bsp"]
    return bsp + res


def _dkan_ref(x, layer_params):
    for p in layer_params:
        x = _dkan_linear_ref(x, p)
    return x


# ----------------------------------------------------------------------------
if __name__ == "__main__":
    layers_hidden = [32, 64, 16]
    batch = 8

    root = jax.random.PRNGKey(0)
    kx, *lkeys = jax.random.split(root, len(layers_hidden))
    x = jax.random.normal(kx, (batch, layers_hidden[0]), jnp.float32)

    n_layers = len(layers_hidden) - 1
    layer_params = [
        init_dkan_linear(lkeys[i], fin, fout,
                         pad_out_to=128 if i == n_layers - 1 else None)
        for i, (fin, fout) in enumerate(zip(layers_hidden, layers_hidden[1:]))
    ]

    y = dkan_forward(x, layer_params)
    y = jax.block_until_ready(y)

    y_ref = _dkan_ref(x, layer_params)
    assert y.shape == (batch, layers_hidden[-1])
    assert bool(jnp.allclose(y, y_ref, rtol=5e-2, atol=5e-2)), (
        "Pallas DKAN output mismatch vs JAX reference")

    print("KERNEL_OK")
</pallas_src>

<mosaic_0001>
module attributes {stable_mosaic.version = 11 : i64} {
  func.func @kernel(%arg0: memref<8x32xf32, #tpu.memory_space<vmem>>, %arg1: memref<384x64xbf16, #tpu.memory_space<vmem>>, %arg2: memref<1x64xf32, #tpu.memory_space<vmem>>, %arg3: memref<5x384xf32, #tpu.memory_space<vmem>>, %arg4: memref<768x128xbf16, #tpu.memory_space<vmem>>, %arg5: memref<1x128xf32, #tpu.memory_space<vmem>>, %arg6: memref<5x768xf32, #tpu.memory_space<vmem>>, %arg7: memref<8x128xf32, #tpu.memory_space<vmem>>) attributes {dimension_semantics = [], scalar_prefetch = 0 : i64, scratch_operands = 0 : i64, tpu.core_type = #tpu.core_type<tc>} {
    %c0 = arith.constant 0 : index
    %c0_0 = arith.constant 0 : index
    %0 = vector.load %arg0[%c0, %c0_0] : memref<8x32xf32, #tpu.memory_space<vmem>>, vector<8x32xf32>
    %cst = arith.constant 0.000000e+00 : f32
    %1 = vector.broadcast %cst : f32 to vector<8x32xf32>
    %2 = arith.subf %1, %0 : vector<8x32xf32>
    %3 = math.exp %2 : vector<8x32xf32>
    %cst_1 = arith.constant 1.000000e+00 : f32
    %4 = vector.broadcast %cst_1 : f32 to vector<8x32xf32>
    %5 = arith.addf %4, %3 : vector<8x32xf32>
    %6 = tpu.reciprocal %5 {approx = true} : vector<8x32xf32> -> vector<8x32xf32>
    %7 = arith.mulf %0, %6 : vector<8x32xf32>
    %cst_2 = arith.constant dense<0.000000e+00> : vector<32xf32>
    %8 = vector.multi_reduction <add>, %0, %cst_2 [0] : vector<8x32xf32> to vector<32xf32>
    %9 = vector.shape_cast %8 : vector<32xf32> to vector<1x32xf32>
    %cst_3 = arith.constant 8.000000e+00 : f32
    %10 = vector.broadcast %cst_3 : f32 to vector<1x32xf32>
    %11 = arith.divf %9, %10 : vector<1x32xf32>
    %12 = vector.broadcast %11 : vector<1x32xf32> to vector<8x32xf32>
    %13 = arith.subf %0, %12 : vector<8x32xf32>
    %14 = arith.mulf %13, %13 : vector<8x32xf32>
    %cst_4 = arith.constant dense<0.000000e+00> : vector<32xf32>
    %15 = vector.multi_reduction <add>, %14, %cst_4 [0] : vector<8x32xf32> to vector<32xf32>
    %16 = vector.shape_cast %15 : vector<32xf32> to vector<1x32xf32>
    %cst_5 = arith.constant 8.000000e+00 : f32
    %17 = vector.broadcast %cst_5 : f32 to vector<1x32xf32>
    %18 = arith.divf %16, %17 : vector<1x32xf32>
    %cst_6 = arith.constant 9.99999974E-6 : f32
    %19 = vector.broadcast %cst_6 : f32 to vector<1x32xf32>
    %20 = arith.addf %18, %19 : vector<1x32xf32>
    %21 = math.rsqrt %20 : vector<1x32xf32>
    %22 = vector.broadcast %21 : vector<1x32xf32> to vector<8x32xf32>
    %23 = arith.mulf %13, %22 : vector<8x32xf32>
    %c0_7 = arith.constant 0 : index
    %c0_8 = arith.constant 0 : index
    %24 = vector.load %arg3[%c0_7, %c0_8] : memref<5x384xf32, #tpu.memory_space<vmem>>, vector<5x384xf32>
    %25 = vector.extract_strided_slice %24 {offsets = [0, 0], sizes = [1, 384], strides = [1, 1]} : vector<5x384xf32> to vector<1x384xf32>
    %26 = vector.extract_strided_slice %24 {offsets = [1, 0], sizes = [1, 384], strides = [1, 1]} : vector<5x384xf32> to vector<1x384xf32>
    %27 = tpu.concatenate %23, %23, %23, %23, %23, %23, %23, %23, %23, %23, %23, %23 in 1 : vector<8x32xf32>, vector<8x32xf32>, vector<8x32xf32>, vector<8x32xf32>, vector<8x32xf32>, vector<8x32xf32>, vector<8x32xf32>, vector<8x32xf32>, vector<8x32xf32>, vector<8x32xf32>, vector<8x32xf32>, vector<8x32xf32> -> vector<8x384xf32>
    %28 = vector.broadcast %25 : vector<1x384xf32> to vector<8x384xf32>
    %29 = arith.subf %27, %28 : vector<8x384xf32>
    %cst_9 = arith.constant 0.000000e+00 : f32
    %30 = vector.broadcast %cst_9 : f32 to vector<8x384xf32>
    %31 = arith.cmpf oge, %29, %30 : vector<8x384xf32>
    %32 = arith.extui %31 : vector<8x384xi1> to vector<8x384xi32>
    %33 = arith.sitofp %32 : vector<8x384xi32> to vector<8x384xf32>
    %34 = vector.broadcast %26 : vector<1x384xf32> to vector<8x384xf32>
    %35 = arith.cmpf oge, %27, %34 : vector<8x384xf32>
    %36 = arith.extui %35 : vector<8x384xi1> to vector<8x384xi32>
    %37 = arith.sitofp %36 : vector<8x384xi32> to vector<8x384xf32>
    %38 = arith.subf %33, %37 : vector<8x384xf32>
    %39 = vector.extract_strided_slice %24 {offsets = [2, 0], sizes = [1, 384], strides = [1, 1]} : vector<5x384xf32> to vector<1x384xf32>
    %40 = vector.broadcast %39 : vector<1x384xf32> to vector<8x384xf32>
    %41 = arith.mulf %29, %40 : vector<8x384xf32>
    %42 = arith.mulf %41, %38 : vector<8x384xf32>
    %43 = vector.extract_strided_slice %41 {offsets = [0, 32], sizes = [8, 352], strides = [1, 1]} : vector<8x384xf32> to vector<8x352xf32>
    %44 = vector.extract_strided_slice %41 {offsets = [0, 0], sizes = [8, 32], strides = [1, 1]} : vector<8x384xf32> to vector<8x32xf32>
    %45 = tpu.concatenate %43, %44 in 1 : vector<8x352xf32>, vector<8x32xf32> -> vector<8x384xf32>
    %cst_10 = arith.constant 1.000000e+00 : f32
    %46 = vector.broadcast %cst_10 : f32 to vector<8x384xf32>
    %47 = arith.subf %46, %45 : vector<8x384xf32>
    %48 = vector.extract_strided_slice %38 {offsets = [0, 32], sizes = [8, 352], strides = [1, 1]} : vector<8x384xf32> to vector<8x352xf32>
    %49 = vector.extract_strided_slice %38 {offsets = [0, 0], sizes = [8, 32], strides = [1, 1]} : vector<8x384xf32> to vector<8x32xf32>
    %50 = tpu.concatenate %48, %49 in 1 : vector<8x352xf32>, vector<8x32xf32> -> vector<8x384xf32>
    %51 = arith.mulf %47, %50 : vector<8x384xf32>
    %52 = arith.addf %42, %51 : vector<8x384xf32>
    %53 = vector.extract_strided_slice %24 {offsets = [3, 0], sizes = [1, 384], strides = [1, 1]} : vector<5x384xf32> to vector<1x384xf32>
    %54 = vector.broadcast %53 : vector<1x384xf32> to vector<8x384xf32>
    %55 = arith.mulf %29, %54 : vector<8x384xf32>
    %56 = arith.mulf %55, %52 : vector<8x384xf32>
    %57 = vector.extract_strided_slice %55 {offsets = [0, 32], sizes = [8, 352], strides = [1, 1]} : vector<8x384xf32> to vector<8x352xf32>
    %58 = vector.extract_strided_slice %55 {offsets = [0, 0], sizes = [8, 32], strides = [1, 1]} : vector<8x384xf32> to vector<8x32xf32>
    %59 = tpu.concatenate %57, %58 in 1 : vector<8x352xf32>, vector<8x32xf32> -> vector<8x384xf32>
    %cst_11 = arith.constant 1.000000e+00 : f32
    %60 = vector.broadcast %cst_11 : f32 to vector<8x384xf32>
    %61 = arith.subf %60, %59 : vector<8x384xf32>
    %62 = vector.extract_strided_slice %52 {offsets = [0, 32], sizes = [8, 352], strides = [1, 1]} : vector<8x384xf32> to vector<8x352xf32>
    %63 = vector.extract_strided_slice %52 {offsets = [0, 0], sizes = [8, 32], strides = [1, 1]} : vector<8x384xf32> to vector<8x32xf32>
    %64 = tpu.concatenate %62, %63 in 1 : vector<8x352xf32>, vector<8x32xf32> -> vector<8x384xf32>
    %65 = arith.mulf %61, %64 : vector<8x384xf32>
    %66 = arith.addf %56, %65 : vector<8x384xf32>
    %67 = vector.extract_strided_slice %24 {offsets = [4, 0], sizes = [1, 384], strides = [1, 1]} : vector<5x384xf32> to vector<1x384xf32>
    %68 = vector.broadcast %67 : vector<1x384xf32> to vector<8x384xf32>
    %69 = arith.mulf %29, %68 : vector<8x384xf32>
    %70 = arith.mulf %69, %66 : vector<8x384xf32>
    %71 = vector.extract_strided_slice %69 {offsets = [0, 32], sizes = [8, 352], strides = [1, 1]} : vector<8x384xf32> to vector<8x352xf32>
    %72 = vector.extract_strided_slice %69 {offsets = [0, 0], sizes = [8, 32], strides = [1, 1]} : vector<8x384xf32> to vector<8x32xf32>
    %73 = tpu.concatenate %71, %72 in 1 : vector<8x352xf32>, vector<8x32xf32> -> vector<8x384xf32>
    %cst_12 = arith.constant 1.000000e+00 : f32
    %74 = vector.broadcast %cst_12 : f32 to vector<8x384xf32>
    %75 = arith.subf %74, %73 : vector<8x384xf32>
    %76 = vector.extract_strided_slice %66 {offsets = [0, 32], sizes = [8, 352], strides = [1, 1]} : vector<8x384xf32> to vector<8x352xf32>
    %77 = vector.extract_strided_slice %66 {offsets = [0, 0], sizes = [8, 32], strides = [1, 1]} : vector<8x384xf32> to vector<8x32xf32>
    %78 = tpu.concatenate %76, %77 in 1 : vector<8x352xf32>, vector<8x32xf32> -> vector<8x384xf32>
    %79 = arith.mulf %75, %78 : vector<8x384xf32>
    %80 = arith.addf %70, %79 : vector<8x384xf32>
    %cst_13 = arith.constant -2.57582974 : f32
    %81 = vector.broadcast %cst_13 : f32 to vector<8x32xf32>
    %82 = arith.subf %81, %23 : vector<8x32xf32>
    %cst_14 = arith.constant 0.000000e+00 : f32
    %83 = vector.broadcast %cst_14 : f32 to vector<8x32xf32>
    %84 = arith.maximumf %82, %83 : vector<8x32xf32>
    %cst_15 = arith.constant 2.57582974 : f32
    %85 = vector.broadcast %cst_15 : f32 to vector<8x32xf32>
    %86 = arith.subf %23, %85 : vector<8x32xf32>
    %cst_16 = arith.constant 0.000000e+00 : f32
    %87 = vector.broadcast %cst_16 : f32 to vector<8x32xf32>
    %88 = arith.maximumf %86, %87 : vector<8x32xf32>
    %89 = vector.extract_strided_slice %80 {offsets = [0, 0], sizes = [8, 288], strides = [1, 1]} : vector<8x384xf32> to vector<8x288xf32>
    %90 = tpu.concatenate %7, %89, %84, %88 in 1 : vector<8x32xf32>, vector<8x288xf32>, vector<8x32xf32>, vector<8x32xf32> -> vector<8x384xf32>
    %91 = arith.truncf %90 : vector<8x384xf32> to vector<8x384xbf16>
    %c0_17 = arith.constant 0 : index
    %c0_18 = arith.constant 0 : index
    %92 = vector.load %arg1[%c0_17, %c0_18] : memref<384x64xbf16, #tpu.memory_space<vmem>>, vector<384x64xbf16>
    %cst_19 = arith.constant dense<0.000000e+00> : vector<8x64xf32>
    %93 = tpu.matmul %91, %92, %cst_19 {dimension_numbers = #tpu.dot_dimension_numbers<[1], [0], [0], [1], [0, 0, 1, 1], [], []>} : vector<8x384xbf16>, vector<384x64xbf16>, vector<8x64xf32> -> vector<8x64xf32>
    %c0_20 = arith.constant 0 : index
    %c0_21 = arith.constant 0 : index
    %94 = vector.load %arg2[%c0_20, %c0_21] : memref<1x64xf32, #tpu.memory_space<vmem>>, vector<1x64xf32>
    %95 = vector.broadcast %94 : vector<1x64xf32> to vector<8x64xf32>
    %96 = arith.addf %93, %95 : vector<8x64xf32>
    %cst_22 = arith.constant 0.000000e+00 : f32
    %97 = vector.broadcast %cst_22 : f32 to vector<8x64xf32>
    %98 = arith.subf %97, %96 : vector<8x64xf32>
    %99 = math.exp %98 : vector<8x64xf32>
    %cst_23 = arith.constant 1.000000e+00 : f32
    %100 = vector.broadcast %cst_23 : f32 to vector<8x64xf32>
    %101 = arith.addf %100, %99 : vector<8x64xf32>
    %102 = tpu.reciprocal %101 {approx = true} : vector<8x64xf32> -> vector<8x64xf32>
    %103 = arith.mulf %96, %102 : vector<8x64xf32>
    %cst_24 = arith.constant dense<0.000000e+00> : vector<64xf32>
    %104 = vector.multi_reduction <add>, %96, %cst_24 [0] : vector<8x64xf32> to vector<64xf32>
    %105 = vector.shape_cast %104 : vector<64xf32> to vector<1x64xf32>
    %cst_25 = arith.constant 8.000000e+00 : f32
    %106 = vector.broadcast %cst_25 : f32 to vector<1x64xf32>
    %107 = arith.divf %105, %106 : vector<1x64xf32>
    %108 = vector.broadcast %107 : vector<1x64xf32> to vector<8x64xf32>
    %109 = arith.subf %96, %108 : vector<8x64xf32>
    %110 = arith.mulf %109, %109 : vector<8x64xf32>
    %cst_26 = arith.constant dense<0.000000e+00> : vector<64xf32>
    %111 = vector.multi_reduction <add>, %110, %cst_26 [0] : vector<8x64xf32> to vector<64xf32>
    %112 = vector.shape_cast %111 : vector<64xf32> to vector<1x64xf32>
    %cst_27 = arith.constant 8.000000e+00 : f32
    %113 = vector.broadcast %cst_27 : f32 to vector<1x64xf32>
    %114 = arith.divf %112, %113 : vector<1x64xf32>
    %cst_28 = arith.constant 9.99999974E-6 : f32
    %115 = vector.broadcast %cst_28 : f32 to vector<1x64xf32>
    %116 = arith.addf %114, %115 : vector<1x64xf32>
    %117 = math.rsqrt %116 : vector<1x64xf32>
    %118 = vector.broadcast %117 : vector<1x64xf32> to vector<8x64xf32>
    %119 = arith.mulf %109, %118 : vector<8x64xf32>
    %c0_29 = arith.constant 0 : index
    %c0_30 = arith.constant 0 : index
    %120 = vector.load %arg6[%c0_29, %c0_30] : memref<5x768xf32, #tpu.memory_space<vmem>>, vector<5x768xf32>
    %121 = vector.extract_strided_slice %120 {offsets = [0, 0], sizes = [1, 768], strides = [1, 1]} : vector<5x768xf32> to vector<1x768xf32>
    %122 = vector.extract_strided_slice %120 {offsets = [1, 0], sizes = [1, 768], strides = [1, 1]} : vector<5x768xf32> to vector<1x768xf32>
    %123 = tpu.concatenate %119, %119, %119, %119, %119, %119, %119, %119, %119, %119, %119, %119 in 1 : vector<8x64xf32>, vector<8x64xf32>, vector<8x64xf32>, vector<8x64xf32>, vector<8x64xf32>, vector<8x64xf32>, vector<8x64xf32>, vector<8x64xf32>, vector<8x64xf32>, vector<8x64xf32>, vector<8x64xf32>, vector<8x64xf32> -> vector<8x768xf32>
    %124 = vector.broadcast %121 : vector<1x768xf32> to vector<8x768xf32>
    %125 = arith.subf %123, %124 : vector<8x768xf32>
    %cst_31 = arith.constant 0.000000e+00 : f32
    %126 = vector.broadcast %cst_31 : f32 to vector<8x768xf32>
    %127 = arith.cmpf oge, %125, %126 : vector<8x768xf32>
    %128 = arith.extui %127 : vector<8x768xi1> to vector<8x768xi32>
    %129 = arith.sitofp %128 : vector<8x768xi32> to vector<8x768xf32>
    %130 = vector.broadcast %122 : vector<1x768xf32> to vector<8x768xf32>
    %131 = arith.cmpf oge, %123, %130 : vector<8x768xf32>
    %132 = arith.extui %131 : vector<8x768xi1> to vector<8x768xi32>
    %133 = arith.sitofp %132 : vector<8x768xi32> to vector<8x768xf32>
    %134 = arith.subf %129, %133 : vector<8x768xf32>
    %135 = vector.extract_strided_slice %120 {offsets = [2, 0], sizes = [1, 768], strides = [1, 1]} : vector<5x768xf32> to vector<1x768xf32>
    %136 = vector.broadcast %135 : vector<1x768xf32> to vector<8x768xf32>
    %137 = arith.mulf %125, %136 : vector<8x768xf32>
    %138 = arith.mulf %137, %134 : vector<8x768xf32>
    %139 = vector.extract_strided_slice %137 {offsets = [0, 64], sizes = [8, 704], strides = [1, 1]} : vector<8x768xf32> to vector<8x704xf32>
    %140 = vector.extract_strided_slice %137 {offsets = [0, 0], sizes = [8, 64], strides = [1, 1]} : vector<8x768xf32> to vector<8x64xf32>
    %141 = tpu.concatenate %139, %140 in 1 : vector<8x704xf32>, vector<8x64xf32> -> vector<8x768xf32>
    %cst_32 = arith.constant 1.000000e+00 : f32
    %142 = vector.broadcast %cst_32 : f32 to vector<8x768xf32>
    %143 = arith.subf %142, %141 : vector<8x768xf32>
    %144 = vector.extract_strided_slice %134 {offsets = [0, 64], sizes = [8, 704], strides = [1, 1]} : vector<8x768xf32> to vector<8x704xf32>
    %145 = vector.extract_strided_slice %134 {offsets = [0, 0], sizes = [8, 64], strides = [1, 1]} : vector<8x768xf32> to vector<8x64xf32>
    %146 = tpu.concatenate %144, %145 in 1 : vector<8x704xf32>, vector<8x64xf32> -> vector<8x768xf32>
    %147 = arith.mulf %143, %146 : vector<8x768xf32>
    %148 = arith.addf %138, %147 : vector<8x768xf32>
    %149 = vector.extract_strided_slice %120 {offsets = [3, 0], sizes = [1, 768], strides = [1, 1]} : vector<5x768xf32> to vector<1x768xf32>
    %150 = vector.broadcast %149 : vector<1x768xf32> to vector<8x768xf32>
    %151 = arith.mulf %125, %150 : vector<8x768xf32>
    %152 = arith.mulf %151, %148 : vector<8x768xf32>
    %153 = vector.extract_strided_slice %151 {offsets = [0, 64], sizes = [8, 704], strides = [1, 1]} : vector<8x768xf32> to vector<8x704xf32>
    %154 = vector.extract_strided_slice %151 {offsets = [0, 0], sizes = [8, 64], strides = [1, 1]} : vector<8x768xf32> to vector<8x64xf32>
    %155 = tpu.concatenate %153, %154 in 1 : vector<8x704xf32>, vector<8x64xf32> -> vector<8x768xf32>
    %cst_33 = arith.constant 1.000000e+00 : f32
    %156 = vector.broadcast %cst_33 : f32 to vector<8x768xf32>
    %157 = arith.subf %156, %155 : vector<8x768xf32>
    %158 = vector.extract_strided_slice %148 {offsets = [0, 64], sizes = [8, 704], strides = [1, 1]} : vector<8x768xf32> to vector<8x704xf32>
    %159 = vector.extract_strided_slice %148 {offsets = [0, 0], sizes = [8, 64], strides = [1, 1]} : vector<8x768xf32> to vector<8x64xf32>
    %160 = tpu.concatenate %158, %159 in 1 : vector<8x704xf32>, vector<8x64xf32> -> vector<8x768xf32>
    %161 = arith.mulf %157, %160 : vector<8x768xf32>
    %162 = arith.addf %152, %161 : vector<8x768xf32>
    %163 = vector.extract_strided_slice %120 {offsets = [4, 0], sizes = [1, 768], strides = [1, 1]} : vector<5x768xf32> to vector<1x768xf32>
    %164 = vector.broadcast %163 : vector<1x768xf32> to vector<8x768xf32>
    %165 = arith.mulf %125, %164 : vector<8x768xf32>
    %166 = arith.mulf %165, %162 : vector<8x768xf32>
    %167 = vector.extract_strided_slice %165 {offsets = [0, 64], sizes = [8, 704], strides = [1, 1]} : vector<8x768xf32> to vector<8x704xf32>
    %168 = vector.extract_strided_slice %165 {offsets = [0, 0], sizes = [8, 64], strides = [1, 1]} : vector<8x768xf32> to vector<8x64xf32>
    %169 = tpu.concatenate %167, %168 in 1 : vector<8x704xf32>, vector<8x64xf32> -> vector<8x768xf32>
    %cst_34 = arith.constant 1.000000e+00 : f32
    %170 = vector.broadcast %cst_34 : f32 to vector<8x768xf32>
    %171 = arith.subf %170, %169 : vector<8x768xf32>
    %172 = vector.extract_strided_slice %162 {offsets = [0, 64], sizes = [8, 704], strides = [1, 1]} : vector<8x768xf32> to vector<8x704xf32>
    %173 = vector.extract_strided_slice %162 {offsets = [0, 0], sizes = [8, 64], strides = [1, 1]} : vector<8x768xf32> to vector<8x64xf32>
    %174 = tpu.concatenate %172, %173 in 1 : vector<8x704xf32>, vector<8x64xf32> -> vector<8x768xf32>
    %175 = arith.mulf %171, %174 : vector<8x768xf32>
    %176 = arith.addf %166, %175 : vector<8x768xf32>
    %cst_35 = arith.constant -2.57582974 : f32
    %177 = vector.broadcast %cst_35 : f32 to vector<8x64xf32>
    %178 = arith.subf %177, %119 : vector<8x64xf32>
    %cst_36 = arith.constant 0.000000e+00 : f32
    %179 = vector.broadcast %cst_36 : f32 to vector<8x64xf32>
    %180 = arith.maximumf %178, %179 : vector<8x64xf32>
    %cst_37 = arith.constant 2.57582974 : f32
    %181 = vector.broadcast %cst_37 : f32 to vector<8x64xf32>
    %182 = arith.subf %119, %181 : vector<8x64xf32>
    %cst_38 = arith.constant 0.000000e+00 : f32
    %183 = vector.broadcast %cst_38 : f32 to vector<8x64xf32>
    %184 = arith.maximumf %182, %183 : vector<8x64xf32>
    %185 = vector.extract_strided_slice %176 {offsets = [0, 0], sizes = [8, 576], strides = [1, 1]} : vector<8x768xf32> to vector<8x576xf32>
    %186 = tpu.concatenate %103, %185, %180, %184 in 1 : vector<8x64xf32>, vector<8x576xf32>, vector<8x64xf32>, vector<8x64xf32> -> vector<8x768xf32>
    %187 = arith.truncf %186 : vector<8x768xf32> to vector<8x768xbf16>
    %c0_39 = arith.constant 0 : index
    %c0_40 = arith.constant 0 : index
    %188 = vector.load %arg4[%c0_39, %c0_40] : memref<768x128xbf16, #tpu.memory_space<vmem>>, vector<768x128xbf16>
    %cst_41 = arith.constant dense<0.000000e+00> : vector<8x128xf32>
    %189 = tpu.matmul %187, %188, %cst_41 {dimension_numbers = #tpu.dot_dimension_numbers<[1], [0], [0], [1], [0, 0, 1, 1], [], []>} : vector<8x768xbf16>, vector<768x128xbf16>, vector<8x128xf32> -> vector<8x128xf32>
    %c0_42 = arith.constant 0 : index
    %c0_43 = arith.constant 0 : index
    %190 = vector.load %arg5[%c0_42, %c0_43] : memref<1x128xf32, #tpu.memory_space<vmem>>, vector<1x128xf32>
    %191 = vector.broadcast %190 : vector<1x128xf32> to vector<8x128xf32>
    %192 = arith.addf %189, %191 : vector<8x128xf32>
    %c0_44 = arith.constant 0 : index
    %c0_45 = arith.constant 0 : index
    %193 = vector.load %arg7[%c0_44, %c0_45] : memref<8x128xf32, #tpu.memory_space<vmem>>, vector<8x128xf32>
    tpu.vector_store %arg7[%c0_44, %c0_45], %192 {strides = array<i32>} : memref<8x128xf32, #tpu.memory_space<vmem>>, vector<8x128xf32>,
    return
  }
}

</mosaic_0001>

<bundles_post_ra>
// kernel: tpu_custom_call.1
= control target key start
LH: loop header
LB: loop body
LE: loop exit
PB: predicated region body
PF: predicated region fallthrough
CT: control target
= control target key end

     0   :  { %12 = vsyncpa [#allocation3], 0  ;;  %s2449_s0 = inlined_call_operand.vmem [shape: f32[8,32], index: 0, kind: input, shape index: {}]   ;;  %s2450_s1 = inlined_call_operand.vmem [shape: bf16[384,64], index: 1, kind: input, shape index: {}]   ;;  %s2451_s2 = inlined_call_operand.vmem [shape: f32[1,64], index: 2, kind: input, shape index: {}]   ;;  %s2452_s3 = inlined_call_operand.vmem [shape: f32[5,384], index: 3, kind: input, shape index: {}]   ;;  %s2453_s4 = inlined_call_operand.hbm [shape: bf16[768,128], index: 4, kind: input, shape index: {}]   ;;  %s2454_s5 = inlined_call_operand.vmem [shape: f32[1,128], index: 5, kind: input, shape index: {}]   ;;  %s2455_s6 = inlined_call_operand.vmem [shape: f32[5,768], index: 6, kind: input, shape index: {}]   ;;  %s2456_s7 = inlined_call_operand.hbm [shape: f32[8,128], index: 7, kind: output, shape index: {}]  }
   0x1   :  { %13 = vsyncpa [#allocation4], 0  ;;  %s26_s26 = sshll.u32 %s2453_s4, 4  ;;  %s1934_s27 = smov [#allocation2]   ;;  %s27_s26 = int_to_ptr.hbm [resolvable:$true] %s26_s26 }
   0x2   :  { %s28_s28 = sshll.u32 %s1934_s27, 4  ;;  %s1935_s29 = smov 64   ;;  %s29_s28 = int_to_ptr.vmem [resolvable:$true] %s28_s28 }
   0x3   :  { %s1936_s30 = smov 4  }
   0x4   :  { %34 = dma.hbm_to_vmem [thread:$0]  %s27_s26, 6144, %s29_s28, [#allocation3], %s1935_s29, %s1935_s29, %s1936_s30  }
   0x5   :  { %1930 = dma.done.wait [#allocation3], 6144  }
   0x6   :  { %1931 = vsyncadd [#allocation3], 4294961152  ;;  %v1937_v0 = vmov 8.0   ;;  %vm50_vm0 = vcmask 261120   ;;  %v1990_v2 = vld [vmem:[%s2449_s0] sm:$0xff]  ;;  %s1938_s0 = smov 32  }
   0x7   :  { %1868 = vrcp.f32 %v1937_v0  ;;  %v51_v3 = vsel %vm50_vm0, %v1990_v2, 0.0  ;;  %s1939_s4 = smov 96   ;;  %v88_v36 = vld [vmem:[%s2452_s3] sm:$0x1f]  ;;  %v2014_v37 = vld [vmem:[%s2452_s3 + $0x10] sm:$0x1f] }
   0x8   :  { %v52_v5 = vrot.slane %v51_v3, 4  ;;  %v89_v38 = vld [vmem:[%s2452_s3 + $0x8] sm:$0x1f]  ;;  %vm102_vm5 = vcmask 523264   ;;  %vm104_vm6 = vcmask 785408   ;;  %v106_v39 = vperm.slane %v88_v36, 0 }
   0x9   :  { %v108_v40 = vperm.slane %v2014_v37, 0  ;;  %v107_v42 = vperm.slane %v89_v38, 0  ;;  %v122_v43 = vperm.slane %v89_v38, 1  ;;  %v121_v46 = vperm.slane %v88_v36, 1  ;;  %s1941_s26 = smov [#allocation5]   ;;  %s1458_s8 = sshll.u32 %s2456_s7, 4  ;;  %s1459_s8 = int_to_ptr.hbm [resolvable:$true] %s1458_s8 }
   0xa   :  { %v53_v7 = vadd.f32 %v52_v5, %v51_v3  ;;  %v123_v47 = vperm.slane %v2014_v37, 1  ;;  %v137_v49 = vperm.slane %v89_v38, 2  ;;  %v136_v50 = vperm.slane %v88_v36, 2  ;;  %s1456_s27 = sshll.u32 %s1941_s26, 4  ;;  %s1457_s27 = int_to_ptr.vmem [resolvable:$true] %s1456_s27 }
   0xb   :  { %v138_v52 = vperm.slane %v2014_v37, 2  ;;  %v238_v53 = vperm.slane %v2014_v37, 4  ;;  %v237_v58 = vperm.slane %v89_v38, 4  ;;  %v236_v59 = vperm.slane %v88_v36, 4 }
   0xc   :  { %v54_v9 = vrot.slane %v53_v7, 2  ;;  %v1940_v62 = vmov 0.0  }
   0xd   :  { %v1869_v1 = vpop.eup %1868 }
   0xe   :  { %v59_v4 = vmul.f32 8.0, %v1869_v1  ;;  %v55_v11 = vadd.f32 %v54_v9, %v53_v7  ;;  %vm63_vm1 = vweird.f32 %v1869_v1 }
  0x10   :  { %v60_v6 = vsub.f32 1.0, %v59_v4  ;;  %v56_v12 = vrot.slane %v55_v11, 1 }
  0x12   :  { %v61_v8 = vmul.f32 %v1869_v1, %v60_v6  ;;  %v57_v14 = vadd.f32 %v56_v12, %v55_v11 }
  0x14   :  { %v62_v10 = vadd.f32 %v1869_v1, %v61_v8 }
  0x16   :  { %v1994_v13 = vsel %vm63_vm1, %v1869_v1, %v62_v10 }
  0x17   :  { %v65_v15 = vmul.f32 %v1994_v13, %v57_v14 }
  0x19   :  { %v66_v16 = vsub.f32 %v1990_v2, %v65_v15 }
  0x1b   :  { %v67_v17 = vmul.f32 %v66_v16, %v66_v16 }
  0x1d   :  { %v68_v18 = vsel %vm50_vm0, %v67_v17, 0.0 }
  0x1e   :  { %v69_v19 = vrot.slane %v68_v18, 4 }
  0x20   :  { %v70_v20 = vadd.f32 %v69_v19, %v68_v18  ;;  %v187_v19 = vperm.slane %v89_v38, 3 }
  0x22   :  { %v71_v21 = vrot.slane %v70_v20, 2 }
  0x24   :  { %v72_v22 = vadd.f32 %v71_v21, %v70_v20  ;;  %v188_v21 = vperm.slane %v2014_v37, 3 }
  0x26   :  { %v73_v23 = vrot.slane %v72_v22, 1 }
  0x28   :  { %v74_v24 = vadd.f32 %v73_v23, %v72_v22 }
  0x2a   :  { %v75_v25 = vmul.f32 %v74_v24, %v1994_v13 }
  0x2c   :  { %v76_v26 = vadd.f32 1e-05, %v75_v25 }
  0x2e   :  { %1870 = vrsqrt.f32 %v76_v26  ;;  %vm83_vm2 = vweird.f32 %v76_v26 }
  0x34   :  { %v1871_v27 = vpop.eup %1870 }
  0x35   :  { %v78_v28 = vmul.f32 %v1871_v27, %v76_v26  ;;  %vm84_vm3 = vweird.f32 %v1871_v27 }
  0x36   :  { %vm85_vm4 = vmor %vm83_vm2, %vm84_vm3 }
  0x37   :  { %v79_v29 = vmul.f32 %v1871_v27, %v78_v28 }
  0x39   :  { %v80_v30 = vmul.f32 0.5, %v79_v29 }
  0x3b   :  { %v81_v31 = vsub.f32 1.5, %v80_v30 }
  0x3d   :  { %v82_v32 = vmul.f32 %v1871_v27, %v81_v31 }
  0x3f   :  { %v86_v33 = vsel %vm85_vm4, %v1871_v27, %v82_v32 }
  0x40   :  { %v2000_v34 = vmul.f32 %v86_v33, %v66_v16  ;;  %v186_v16 = vperm.slane %v88_v36, 3 }
  0x42   :  { %92 = vrot.lane.b32.xlu0 %v2000_v34, %s1938_s0  ;;  %98 = vrot.lane.b32.xlu1 %v2000_v34, %s1939_s4 }
  0x4a   :  { %95 = vrot.lane.b32.xlu0 %v2000_v34, %s1935_s29 }
  0xb4   :  { %v93_v35 = vpop.permute.xlu0 %92  ;;  %v99_v41 = vpop.permute.xlu1 %98 }
  0xb5   :  { %v101_v44 = vsel %vm50_vm0, %v2000_v34, %v93_v35 }
  0xbc   :  { %v96_v45 = vpop.permute.xlu0 %95 }
  0xbd   :  { %v103_v48 = vsel %vm102_vm5, %v101_v44, %v96_v45 }
  0xbe   :  { %v105_v51 = vsel %vm104_vm6, %v103_v48, %v99_v41 }
  0xbf   :  { %v109_v54 = vsub.f32 %v105_v51, %v106_v39  ;;  %v111_v55 = vsub.f32 %v105_v51, %v108_v40  ;;  %v110_v56 = vsub.f32 %v105_v51, %v107_v42  ;;  %vm125_vm7 = vcmp.ge.f32.partialorder %v105_v51, %v122_v43 }
  0xc0   :  { %vm124_vm8 = vcmp.ge.f32.partialorder %v105_v51, %v121_v46  ;;  %vm2027_vm9 = vcmp.ge.f32.partialorder %v105_v51, %v123_v47  ;;  %v1472_v63 = vsel %vm125_vm7, 1.0, %v1940_v62 }
  0xc1   :  { %v140_v60 = vmul.f32 %v137_v49, %v110_v56  ;;  %vm113_vm10 = vcmp.ge.f32.partialorder %v110_v56, 0.0  ;;  %v139_v61 = vmul.f32 %v136_v50, %v109_v54  ;;  %vm112_vm11 = vcmp.ge.f32.partialorder %v109_v54, 0.0 }
  0xc2   :  { %v1469_v0 = vsel %vm113_vm10, 1.0, %v1940_v62  ;;  %v1468_v1 = vsel %vm112_vm11, 1.0, %v1940_v62  ;;  %v1471_v3 = vsel %vm124_vm8, 1.0, %v1940_v62  ;;  %vm114_vm12 = vcmp.ge.f32.partialorder %v111_v55, 0.0 }
  0xc3   :  { %150 = vrot.lane.b32.xlu2 %v140_v60, %s1939_s4  ;;  %v134_v4 = vsub.f32 %v1469_v0, %v1472_v63  ;;  %148 = vrot.lane.b32.xlu1 %v139_v61, %s1939_s4  ;;  %v133_v5 = vsub.f32 %v1468_v1, %v1471_v3  ;;  %v141_v6 = vmul.f32 %v138_v52, %v111_v55  ;;  %v1470_v7 = vsel %vm114_vm12, 1.0, %v1940_v62 }
  0xc4   :  { %v1473_v8 = vsel %vm2027_vm9, 1.0, %v1940_v62  ;;  %v2042_v12 = vmul.f32 %v238_v53, %v111_v55  ;;  %v2044_v14 = vmul.f32 %v237_v58, %v110_v56  ;;  %v2046_v15 = vmul.f32 %v236_v59, %v109_v54 }
  0xc5   :  { %v143_v9 = vmul.f32 %v140_v60, %v134_v4  ;;  %167 = vrot.lane.b32.xlu0 %v133_v5, %s1939_s4  ;;  %v135_v10 = vsub.f32 %v1470_v7, %v1473_v8  ;;  %v142_v11 = vmul.f32 %v139_v61, %v133_v5  ;;  %v189_v18 = vmul.f32 %v186_v16, %v109_v54  ;;  %v1791_v16 = vld [vmem:[%s2450_s1 + $0x78] sm:$0xff] }
  0xc6   :  { %v190_v20 = vmul.f32 %v187_v19, %v110_v56  ;;  %v191_v22 = vmul.f32 %v188_v21, %v111_v55  ;;  %v286_v7 = vsub.f32 -2.5758297, %v2000_v34  ;;  %527 = vmatpush.bf16.msra.mxu1 %v1791_v16  ;;  %v1790_v19 = vld [vmem:[%s2450_s1 + $0x70] sm:$0xff]  ;;  %v1781_v21 = vld [vmem:[%s2450_s1 + $0x28] sm:$0xff] }
  0xc7   :  { %v144_v17 = vmul.f32 %v141_v6, %v135_v10 }
  0xc8   :  { %v287_v8 = vmax.f32 %v286_v7, 0.0 }
  0xca   :  { %528 = vmatpush.bf16.msra.mxu1 %v1790_v19 }
  0xcb   :  { %152 = vrot.lane.b32.xlu2 %v141_v6, %s1939_s4  ;;  %169 = vrot.lane.b32.xlu1 %v134_v4, %s1939_s4 }
  0xcd   :  { %198 = vrot.lane.b32.xlu0 %v189_v18, %s1939_s4 }
  0xd3   :  { %171 = vrot.lane.b32.xlu2 %v135_v10, %s1939_s4  ;;  %200 = vrot.lane.b32.xlu1 %v190_v20, %s1939_s4  ;;  %v1799_v10 = vld [vmem:[%s2450_s1 + $0xb8] sm:$0xff] }
  0xd4   :  { %540 = vmatpush.bf16.msra.mxu2 %v1799_v10 }
  0xdb   :  { %202 = vrot.lane.b32.xlu2 %v191_v22, %s1939_s4 }
 0x11d   :  { %v151_v23 = vpop.permute.xlu2 %150 }
 0x125   :  { %v153_v24 = vpop.permute.xlu2 %152 }
 0x126   :  { %v155_v32 = vsel %vm104_vm6, %v151_v23, %v153_v24 }
 0x127   :  { %v162_v36 = vsub.f32 1.0, %v155_v32  ;;  %v1779_v32 = vld [vmem:[%s2450_s1 + $0x18] sm:$0xff] }
 0x12d   :  { %v172_v27 = vpop.permute.xlu2 %171 }
 0x135   :  { %v149_v25 = vpop.permute.xlu1 %148  ;;  %v203_v45 = vpop.permute.xlu2 %202 }
 0x136   :  { %v160_v26 = vsel %vm104_vm6, %v153_v24, %v149_v25  ;;  %v154_v33 = vsel %vm104_vm6, %v149_v25, %v151_v23  ;;  %v1789_v24 = vld [vmem:[%s2450_s1 + $0x68] sm:$0xff] }
 0x137   :  { %v163_v28 = vsub.f32 1.0, %v160_v26  ;;  %v168_v29 = vpop.permute.xlu0 %167  ;;  %v161_v37 = vsub.f32 1.0, %v154_v33  ;;  %v1796_v26 = vld [vmem:[%s2450_s1 + $0xa0] sm:$0xff]  ;;  %529 = vmatpush.bf16.msra.mxu1 %v1789_v24 }
 0x138   :  { %v179_v30 = vsel %vm104_vm6, %v172_v27, %v168_v29 }
 0x139   :  { %v182_v31 = vmul.f32 %v179_v30, %v163_v28  ;;  %v1788_v28 = vld [vmem:[%s2450_s1 + $0x60] sm:$0xff] }
 0x13b   :  { %v185_v35 = vadd.f32 %v182_v31, %v144_v17  ;;  %v1795_v31 = vld [vmem:[%s2450_s1 + $0x98] sm:$0xff]  ;;  %530 = vmatpush.bf16.msra.mxu1 %v1788_v28 }
 0x13d   :  { %v170_v38 = vpop.permute.xlu1 %169  ;;  %221 = vrot.lane.b32.xlu2 %v185_v35, %s1939_s4  ;;  %v194_v57 = vmul.f32 %v191_v22, %v185_v35 }
 0x13e   :  { %v173_v39 = vsel %vm104_vm6, %v168_v29, %v170_v38  ;;  %v174_v40 = vsel %vm104_vm6, %v170_v38, %v172_v27  ;;  %v1780_v27 = vld [vmem:[%s2450_s1 + $0x20] sm:$0xff] }
 0x13f   :  { %v180_v41 = vmul.f32 %v173_v39, %v161_v37  ;;  %v181_v42 = vmul.f32 %v174_v40, %v162_v36  ;;  %v199_v46 = vpop.permute.xlu0 %198  ;;  %v1787_v37 = vld [vmem:[%s2450_s1 + $0x58] sm:$0xff] }
 0x140   :  { %v210_v48 = vsel %vm104_vm6, %v203_v45, %v199_v46  ;;  %531 = vmatpush.bf16.msra.mxu1 %v1787_v37 }
 0x141   :  { %v184_v43 = vadd.f32 %v181_v42, %v143_v9  ;;  %v183_v44 = vadd.f32 %v180_v41, %v142_v11  ;;  %v213_v52 = vsub.f32 1.0, %v210_v48  ;;  %v1474_v9 = vadd.f32 -2.5758297, %v2000_v34  ;;  %v1783_v11 = vld [vmem:[%s2450_s1 + $0x38] sm:$0xff]  ;;  %v1782_v34 = vld [vmem:[%s2450_s1 + $0x30] sm:$0xff] }
 0x142   :  { %514 = vmatpush.bf16.msra.mxu0 %v1783_v11 }
 0x143   :  { %219 = vrot.lane.b32.xlu1 %v184_v43, %s1939_s4  ;;  %217 = vrot.lane.b32.xlu0 %v183_v44, %s1939_s4  ;;  %v193_v61 = vmul.f32 %v190_v20, %v184_v43  ;;  %v192_v3 = vmul.f32 %v189_v18, %v183_v44  ;;  %v289_v17 = vmax.f32 %v1474_v9, 0.0  ;;  %v1798_v18 = vld [vmem:[%s2450_s1 + $0xb0] sm:$0xff]  ;;  %v1797_v20 = vld [vmem:[%s2450_s1 + $0xa8] sm:$0xff] }
 0x144   :  { %541 = vmatpush.bf16.msra.mxu2 %v1798_v18 }
 0x145   :  { %252 = vrot.lane.b32.xlu2 %v2042_v12, %s1939_s4  ;;  %v201_v47 = vpop.permute.xlu1 %200 }
 0x146   :  { %v204_v49 = vsel %vm104_vm6, %v199_v46, %v201_v47  ;;  %v205_v50 = vsel %vm104_vm6, %v201_v47, %v203_v45  ;;  %515 = vmatpush.bf16.msra.mxu0 %v1782_v34  ;;  %v1794_v46 = vld [vmem:[%s2450_s1 + $0x90] sm:$0xff] }
 0x147   :  { %v211_v53 = vsub.f32 1.0, %v204_v49  ;;  %v212_v54 = vsub.f32 1.0, %v205_v50 }
 0x148   :  { %542 = vmatpush.bf16.msra.mxu2 %v1797_v20 }
 0x14a   :  { %516 = vmatpush.bf16.msra.mxu0 %v1781_v21 }
 0x14b   :  { %250 = vrot.lane.b32.xlu1 %v2044_v14, %s1939_s4  ;;  %248 = vrot.lane.b32.xlu0 %v2046_v15, %s1939_s4 }
 0x14c   :  { %543 = vmatpush.bf16.msra.mxu2 %v1796_v26 }
 0x14e   :  { %517 = vmatpush.bf16.msra.mxu0 %v1780_v27 }
 0x150   :  { %544 = vmatpush.bf16.msra.mxu2 %v1795_v31 }
 0x152   :  { %518 = vmatpush.bf16.msra.mxu0 %v1779_v32 }
 0x154   :  { %545 = vmatpush.bf16.msra.mxu2 %v1794_v46 }
 0x197   :  { %v222_v51 = vpop.permute.xlu2 %221 }
 0x19f   :  { %v253_v22 = vpop.permute.xlu2 %252 }
 0x1b5   :  { %v220_v55 = vpop.permute.xlu1 %219  ;;  %v218_v56 = vpop.permute.xlu0 %217 }
 0x1b6   :  { %v224_v58 = vsel %vm104_vm6, %v220_v55, %v222_v51  ;;  %v223_v59 = vsel %vm104_vm6, %v218_v56, %v220_v55  ;;  %v229_v60 = vsel %vm104_vm6, %v222_v51, %v218_v56  ;;  %v1786_v55 = vld [vmem:[%s2450_s1 + $0x50] sm:$0xff]  ;;  %v1793_v56 = vld [vmem:[%s2450_s1 + $0x88] sm:$0xff] }
 0x1b7   :  { %v231_v63 = vmul.f32 %v224_v58, %v212_v54  ;;  %v230_v0 = vmul.f32 %v223_v59, %v211_v53  ;;  %v232_v1 = vmul.f32 %v229_v60, %v213_v52  ;;  %v1778_v54 = vld [vmem:[%s2450_s1 + $0x10] sm:$0xff]  ;;  %532 = vmatpush.bf16.msra.mxu1 %v1786_v55  ;;  %546 = vmatpush.bf16.msra.mxu2 %v1793_v56  ;;  %v1792_v58 = vld [vmem:[%s2450_s1 + $0x80] sm:$0xff]  ;;  %v44_v59 = vsub.f32 0.0, %v1990_v2 }
 0x1b8   :  { %519 = vmatpush.bf16.msra.mxu0 %v1778_v54  ;;  %v1776_v60 = vld [vmem:[%s2450_s1] sm:$0xff] }
 0x1b9   :  { %v234_v4 = vadd.f32 %v231_v63, %v193_v61  ;;  %v235_v5 = vadd.f32 %v232_v1, %v194_v57  ;;  %v2076_v6 = vadd.f32 %v230_v0, %v192_v3  ;;  %v1785_v57 = vld [vmem:[%s2450_s1 + $0x48] sm:$0xff]  ;;  %v1784_v61 = vld [vmem:[%s2450_s1 + $0x40] sm:$0xff]  ;;  %v45_v63 = vmul.f32 1.442695, %v44_v59 }
 0x1ba   :  { %v2215_v59 = vld [vmem:[%s2455_s6 + $0x20] sm:$0x1f] }
 0x1bb   :  { %269 = vrot.lane.b32.xlu1 %v234_v4, %s1939_s4  ;;  %271 = vrot.lane.b32.xlu2 %v235_v5, %s1939_s4  ;;  %v243_v41 = vmul.f32 %v2044_v14, %v234_v4  ;;  %v244_v44 = vmul.f32 %v2042_v12, %v235_v5  ;;  %v242_v52 = vmul.f32 %v2046_v15, %v2076_v6  ;;  %v1777_v15 = vld [vmem:[%s2450_s1 + $0x8] sm:$0xff]  ;;  %1872 = vpow2.f32 %v45_v63 }
 0x1bc   :  { %267 = vrot.lane.b32.xlu0 %v2076_v6, %s1939_s4  ;;  %520 = vmatpush.bf16.msra.mxu0 %v1777_v15  ;;  %v2200_v15 = vld [vmem:[%s2455_s6 + $0x8] sm:$0x1f] }
 0x1bd   :  { %v251_v23 = vpop.permute.xlu1 %250  ;;  %v249_v25 = vpop.permute.xlu0 %248  ;;  %533 = vmatpush.bf16.msra.mxu1 %v1785_v57  ;;  %547 = vmatpush.bf16.msra.mxu2 %v1792_v58  ;;  %v2205_v57 = vld [vmem:[%s2455_s6] sm:$0x1f]  ;;  %v2210_v58 = vld [vmem:[%s2455_s6 + $0x18] sm:$0x1f]  ;;  %v601_v63 = vperm.slane %v2200_v15, 0 }
 0x1be   :  { %v255_v29 = vsel %vm104_vm6, %v251_v23, %v253_v22  ;;  %v260_v30 = vsel %vm104_vm6, %v253_v22, %v249_v25  ;;  %v254_v49 = vsel %vm104_vm6, %v249_v25, %v251_v23  ;;  %v1866_v22 = vld [vmem:[%s2451_s2] ss:$0 sm:$0xff] }
 0x1bf   :  { %v262_v33 = vsub.f32 1.0, %v255_v29  ;;  %v263_v38 = vsub.f32 1.0, %v260_v30  ;;  %v261_v51 = vsub.f32 1.0, %v254_v49 }
 0x1c0   :  { %521 = vmatpush.bf16.msra.mxu0 %v1776_v60 }
 0x1c1   :  { %534 = vmatpush.bf16.msra.mxu1 %v1784_v61  ;;  %v1873_v0 = vpop.eup %1872 }
 0x1c2   :  { %v47_v1 = vadd.f32 1.0, %v1873_v0  ;;  %v600_v0 = vperm.slane %v2205_v57, 0 }
 0x1c3   :  { %305 = vrot.lane.b32.xlu1 %v287_v8, %s1935_s29  ;;  %309 = vrot.lane.b32.xlu2 %v289_v17, %s1939_s4 }
 0x1c4   :  { %1874 = vrcp.f32 %v47_v1  ;;  %v631_v1 = vperm.slane %v2200_v15, 1 }
 0x1ca   :  { %v1875_v7 = vpop.eup %1874 }
 0x1cb   :  { %v49_v16 = vmul.f32 %v1875_v7, %v1990_v2 }
 0x215   :  { %v272_v35 = vpop.permute.xlu2 %271 }
 0x21d   :  { %v310_v8 = vpop.permute.xlu2 %309 }
 0x22d   :  { %v270_v36 = vpop.permute.xlu1 %269 }
 0x22e   :  { %v274_v39 = vsel %vm104_vm6, %v270_v36, %v272_v35  ;;  %v268_v40 = vpop.permute.xlu0 %267 }
 0x22f   :  { %v281_v42 = vmul.f32 %v274_v39, %v262_v33  ;;  %v279_v43 = vsel %vm104_vm6, %v272_v35, %v268_v40  ;;  %v273_v14 = vsel %vm104_vm6, %v268_v40, %v270_v36 }
 0x230   :  { %v282_v45 = vmul.f32 %v279_v43, %v263_v38  ;;  %v280_v12 = vmul.f32 %v273_v14, %v261_v51 }
 0x231   :  { %v284_v47 = vadd.f32 %v281_v42, %v243_v41 }
 0x232   :  { %v285_v48 = vadd.f32 %v282_v45, %v244_v44  ;;  %v283_v53 = vadd.f32 %v280_v12, %v242_v52 }
 0x234   :  { %v1856_v50 = vpack.i.bf16 %v285_v48, %v284_v47 }
 0x235   :  { %v306_v6 = vpop.permute.xlu1 %305 }
 0x236   :  { %1857 = vrot.lane.b32.xlu0 %v1856_v50, %s1938_s0 }
 0x23e   :  { %293 = vrot.lane.b32.xlu0 %v283_v53, %s1938_s0 }
 0x2a8   :  { %v1858_v3 = vpop.permute.xlu0 %1857 }
 0x2a9   :  { %v1860_v4 = vunpack.i.h.bf16 %v1858_v3  ;;  %v1859_v5 = vunpack.i.l.bf16 %v1858_v3  ;;  %v2225_v3 = vld [vmem:[%s2455_s6 + $0x28] sm:$0x1f] }
 0x2ab   :  { %v300_v9 = vsel %vm50_vm0, %v1859_v5, %v1860_v4  ;;  %v603_v4 = vperm.slane %v2210_v58, 0 }
 0x2ac   :  { %v313_v10 = vsel %vm102_vm5, %v300_v9, %v306_v6  ;;  %v604_v6 = vperm.slane %v2215_v59, 0  ;;  %v660_v9 = vperm.slane %v2205_v57, 2 }
 0x2ad   :  { %v314_v11 = vsel %vm104_vm6, %v313_v10, %v310_v8  ;;  %v661_v8 = vperm.slane %v2200_v15, 2  ;;  %v663_v10 = vperm.slane %v2210_v58, 2 }
 0x2ae   :  { %v317_v17 = vpack.c.bf16 %v314_v11, %v314_v11  ;;  %v633_v11 = vperm.slane %v2210_v58, 1 }
 0x2b0   :  { %v294_v18 = vpop.permute.xlu0 %293  ;;  %548 = vmatmul.bf16.vlgmr.msra.gmra.mxu2 %v317_v17  ;;  %v605_v17 = vperm.slane %v2225_v3, 0 }
 0x2b1   :  { %v312_v34 = vsel %vm50_vm0, %v49_v16, %v294_v18  ;;  %v299_v19 = vsel %vm50_vm0, %v294_v18, %v1859_v5  ;;  %v630_v5 = vperm.slane %v2205_v57, 1  ;;  %v664_v16 = vperm.slane %v2215_v59, 2 }
 0x2b2   :  { %v315_v20 = vpack.c.bf16 %v312_v34, %v312_v34  ;;  %v316_v21 = vpack.c.bf16 %v299_v19, %v299_v19  ;;  %v635_v18 = vperm.slane %v2225_v3, 1  ;;  %v634_v34 = vperm.slane %v2215_v59, 1 }
 0x2b4   :  { %522 = vmatmul.bf16.vlgmr.msra.gmra.mxu0 %v315_v20  ;;  %535 = vmatmul.bf16.vlgmr.msra.gmra.mxu1 %v316_v21  ;;  %v665_v20 = vperm.slane %v2225_v3, 2  ;;  %v761_v21 = vperm.slane %v2210_v58, 3 }
 0x331   :  { %v523_v23 = vpop.f32.mrf.mxu0  ;;  %v536_v24 = vpop.f32.mrf.mxu1 }
 0x332   :  { %v524_v25 = vadd.f32 %v1866_v22, %v523_v23  ;;  %v762_v22 = vperm.slane %v2215_v59, 3  ;;  %v763_v23 = vperm.slane %v2225_v3, 3 }
 0x333   :  { %v549_v26 = vpop.f32.mrf.mxu2 }
 0x334   :  { %v537_v2 = vadd.f32 %v536_v24, %v524_v25  ;;  %v856_v25 = vperm.slane %v2205_v57, 4 }
 0x336   :  { %v2180_v27 = vadd.f32 %v549_v26, %v537_v2  ;;  %v857_v26 = vperm.slane %v2200_v15, 4 }
 0x338   :  { %v559_v28 = vsel %vm102_vm5, %v2180_v27, 0.0 }
 0x339   :  { %v560_v29 = vrot.slane %v559_v28, 4  ;;  %v525_v30 = vpop.f32.mrf.mxu0  ;;  %v538_v31 = vpop.f32.mrf.mxu1 }
 0x33b   :  { %v561_v32 = vadd.f32 %v560_v29, %v559_v28  ;;  %v551_v33 = vpop.f32.mrf.mxu2 }
 0x33c   :  { %v859_v33 = vperm.slane %v2210_v58, 4 }
 0x33d   :  { %v562_v35 = vrot.slane %v561_v32, 2 }
 0x33f   :  { %v563_v36 = vadd.f32 %v562_v35, %v561_v32  ;;  %v860_v32 = vperm.slane %v2215_v59, 4 }
 0x341   :  { %v564_v37 = vrot.slane %v563_v36, 1 }
 0x343   :  { %v565_v38 = vadd.f32 %v564_v37, %v563_v36 }
 0x345   :  { %v566_v39 = vmul.f32 %v565_v38, %v1994_v13 }
 0x347   :  { %v567_v40 = vsub.f32 %v2180_v27, %v566_v39 }
 0x349   :  { %v568_v41 = vmul.f32 %v567_v40, %v567_v40 }
 0x34b   :  { %v569_v42 = vsel %vm102_vm5, %v568_v41, 0.0 }
 0x34c   :  { %v570_v43 = vrot.slane %v569_v42, 4 }
 0x34e   :  { %v571_v44 = vadd.f32 %v570_v43, %v569_v42 }
 0x350   :  { %v572_v45 = vrot.slane %v571_v44, 2 }
 0x352   :  { %v573_v46 = vadd.f32 %v572_v45, %v571_v44 }
 0x354   :  { %v574_v47 = vrot.slane %v573_v46, 1 }
 0x356   :  { %v575_v48 = vadd.f32 %v574_v47, %v573_v46 }
 0x358   :  { %v576_v49 = vmul.f32 %v575_v48, %v1994_v13  ;;  %v2195_v13 = vld [vmem:[%s2455_s6 + $0x10] sm:$0x1f] }
 0x359   :  { %v602_v60 = vperm.slane %v2195_v13, 0  ;;  %v662_v61 = vperm.slane %v2195_v13, 2  ;;  %v632_v7 = vperm.slane %v2195_v13, 1  ;;  %v858_v2 = vperm.slane %v2195_v13, 4 }
 0x35a   :  { %v577_v50 = vadd.f32 1e-05, %v576_v49 }
 0x35c   :  { %1876 = vrsqrt.f32 %v577_v50  ;;  %vm584_vm14 = vweird.f32 %v577_v50 }
 0x362   :  { %v1877_v14 = vpop.eup %1876 }
 0x363   :  { %v579_v51 = vmul.f32 %v1877_v14, %v577_v50  ;;  %vm585_vm13 = vweird.f32 %v1877_v14 }
 0x364   :  { %vm586_vm15 = vmor %vm584_vm14, %vm585_vm13 }
 0x365   :  { %v580_v12 = vmul.f32 %v1877_v14, %v579_v51 }
 0x367   :  { %v581_v52 = vmul.f32 0.5, %v580_v12  ;;  %v861_v12 = vperm.slane %v2225_v3, 4 }
 0x369   :  { %v582_v53 = vsub.f32 1.5, %v581_v52 }
 0x36b   :  { %v583_v54 = vmul.f32 %v1877_v14, %v582_v53 }
 0x36d   :  { %v587_v55 = vsel %vm586_vm15, %v1877_v14, %v583_v54 }
 0x36e   :  { %v2188_v56 = vmul.f32 %v587_v55, %v567_v40 }
 0x370   :  { %596 = vrot.lane.b32.xlu1 %v2188_v56, %s1935_s29 }
 0x3e2   :  { %v597_v19 = vpop.permute.xlu1 %596 }
 0x3e3   :  { %v599_v24 = vsel %vm102_vm5, %v2188_v56, %v597_v19  ;;  %v758_v19 = vperm.slane %v2205_v57, 3 }
 0x3e4   :  { %v2248_v28 = vsub.f32 %v599_v24, %v602_v60  ;;  %v2250_v29 = vsub.f32 %v599_v24, %v601_v63  ;;  %v2252_v30 = vsub.f32 %v599_v24, %v600_v0  ;;  %vm637_vm0 = vcmp.ge.f32.partialorder %v599_v24, %v631_v1 }
 0x3e5   :  { %v609_v31 = vsub.f32 %v599_v24, %v603_v4  ;;  %vm636_vm1 = vcmp.ge.f32.partialorder %v599_v24, %v630_v5  ;;  %v1578_v39 = vsel %vm637_vm0, 1.0, %v1940_v62  ;;  %v610_v40 = vsub.f32 %v599_v24, %v604_v6 }
 0x3e6   :  { %v668_v35 = vmul.f32 %v662_v61, %v2248_v28  ;;  %v667_v36 = vmul.f32 %v661_v8, %v2250_v29  ;;  %v666_v37 = vmul.f32 %v660_v9, %v2252_v30  ;;  %vm613_vm2 = vcmp.ge.f32.partialorder %v2250_v29, 0.0 }
 0x3e7   :  { %v1572_v38 = vsel %vm613_vm2, 1.0, %v1940_v62  ;;  %vm612_vm3 = vcmp.ge.f32.partialorder %v2252_v30, 0.0  ;;  %v1577_v43 = vsel %vm636_vm1, 1.0, %v1940_v62  ;;  %vm614_vm4 = vcmp.ge.f32.partialorder %v2248_v28, 0.0 }
 0x3e8   :  { %688 = vrot.lane.b32.xlu1 %v668_v35, %s1935_s29  ;;  %686 = vrot.lane.b32.xlu0 %v667_v36, %s1935_s29  ;;  %v655_v41 = vsub.f32 %v1572_v38, %v1578_v39  ;;  %v1571_v42 = vsel %vm612_vm3, 1.0, %v1940_v62  ;;  %v1573_v45 = vsel %vm614_vm4, 1.0, %v1940_v62  ;;  %vm638_vm6 = vcmp.ge.f32.partialorder %v599_v24, %v632_v7 }
 0x3e9   :  { %684 = vrot.lane.b32.xlu2 %v666_v37, %s1935_s29  ;;  %v654_v44 = vsub.f32 %v1571_v42, %v1577_v43  ;;  %vm615_vm7 = vcmp.ge.f32.partialorder %v609_v31, 0.0  ;;  %v1579_v46 = vsel %vm638_vm6, 1.0, %v1940_v62  ;;  %vm639_vm8 = vcmp.ge.f32.partialorder %v599_v24, %v633_v11 }
 0x3ea   :  { %v1574_v47 = vsel %vm615_vm7, 1.0, %v1940_v62  ;;  %v611_v48 = vsub.f32 %v599_v24, %v605_v17  ;;  %v656_v49 = vsub.f32 %v1573_v45, %v1579_v46  ;;  %v1580_v50 = vsel %vm639_vm8, 1.0, %v1940_v62 }
 0x3eb   :  { %vm641_vm9 = vcmp.ge.f32.partialorder %v599_v24, %v635_v18  ;;  %vm616_vm10 = vcmp.ge.f32.partialorder %v610_v40, 0.0  ;;  %v657_v14 = vsub.f32 %v1574_v47, %v1580_v50  ;;  %v669_v52 = vmul.f32 %v663_v10, %v609_v31 }
 0x3ec   :  { %vm617_vm11 = vcmp.ge.f32.partialorder %v611_v48, 0.0  ;;  %v1575_v51 = vsel %vm616_vm10, 1.0, %v1940_v62  ;;  %v1582_v54 = vsel %vm641_vm9, 1.0, %v1940_v62  ;;  %vm640_vm12 = vcmp.ge.f32.partialorder %v599_v24, %v634_v34 }
 0x3ed   :  { %v1576_v53 = vsel %vm617_vm11, 1.0, %v1940_v62  ;;  %v670_v55 = vmul.f32 %v664_v16, %v610_v40  ;;  %v1581_v59 = vsel %vm640_vm12, 1.0, %v1940_v62  ;;  %v671_v60 = vmul.f32 %v665_v20, %v611_v48 }
 0x3ee   :  { %v659_v58 = vsub.f32 %v1576_v53, %v1582_v54  ;;  %v658_v61 = vsub.f32 %v1575_v51, %v1581_v59  ;;  %v673_v63 = vmul.f32 %v667_v36, %v655_v41  ;;  %v672_v0 = vmul.f32 %v666_v37, %v654_v44 }
 0x3ef   :  { %v674_v1 = vmul.f32 %v668_v35, %v656_v49  ;;  %v2280_v3 = vmul.f32 %v761_v21, %v609_v31  ;;  %v675_v4 = vmul.f32 %v669_v52, %v657_v14  ;;  %v2282_v5 = vmul.f32 %v762_v22, %v610_v40 }
 0x3f0   :  { %723 = vrot.lane.b32.xlu1 %v655_v41, %s1935_s29  ;;  %721 = vrot.lane.b32.xlu0 %v654_v44, %s1935_s29  ;;  %v2285_v6 = vmul.f32 %v763_v23, %v611_v48  ;;  %v2287_v7 = vmul.f32 %v670_v55, %v658_v61  ;;  %v2289_v62 = vmul.f32 %v671_v60, %v659_v58  ;;  %v760_v18 = vperm.slane %v2195_v13, 3 }
 0x3f1   :  { %690 = vrot.lane.b32.xlu2 %v669_v52, %s1935_s29  ;;  %v2294_v8 = vmul.f32 %v856_v25, %v2252_v30  ;;  %v2299_v9 = vmul.f32 %v857_v26, %v2250_v29  ;;  %v2304_v10 = vmul.f32 %v858_v2, %v2248_v28  ;;  %v2306_v11 = vmul.f32 %v860_v32, %v610_v40 }
 0x3f2   :  { %v2308_v16 = vmul.f32 %v859_v33, %v609_v31  ;;  %v2310_v17 = vmul.f32 %v861_v12, %v611_v48  ;;  %v759_v34 = vperm.slane %v2200_v15, 3  ;;  %v2322_v20 = vmul.f32 %v760_v18, %v2248_v28 }
 0x3f3   :  { %v2328_v22 = vmul.f32 %v758_v19, %v2252_v30 }
 0x3f4   :  { %v2325_v21 = vmul.f32 %v759_v34, %v2250_v29 }
 0x3f8   :  { %692 = vrot.lane.b32.xlu1 %v670_v55, %s1935_s29  ;;  %727 = vrot.lane.b32.xlu0 %v657_v14, %s1935_s29 }
 0x3f9   :  { %725 = vrot.lane.b32.xlu2 %v656_v49, %s1935_s29 }
 0x400   :  { %731 = vrot.lane.b32.xlu1 %v659_v58, %s1935_s29  ;;  %694 = vrot.lane.b32.xlu0 %v671_v60, %s1935_s29 }
 0x401   :  { %729 = vrot.lane.b32.xlu2 %v658_v61, %s1935_s29 }
 0x408   :  { %786 = vrot.lane.b32.xlu1 %v2322_v20, %s1935_s29  ;;  %784 = vrot.lane.b32.xlu0 %v2325_v21, %s1935_s29 }
 0x409   :  { %782 = vrot.lane.b32.xlu2 %v2328_v22, %s1935_s29 }
 0x443   :  { %v685_v13 = vpop.permute.xlu2 %684 }
 0x44b   :  { %v691_v15 = vpop.permute.xlu2 %690 }
 0x453   :  { %v726_v26 = vpop.permute.xlu2 %725 }
 0x45a   :  { %v689_v57 = vpop.permute.xlu1 %688  ;;  %v687_v23 = vpop.permute.xlu0 %686 }
 0x45b   :  { %v696_v24 = vsel %vm102_vm5, %v685_v13, %v687_v23  ;;  %v697_v25 = vsel %vm102_vm5, %v687_v23, %v689_v57  ;;  %v698_v38 = vsel %vm102_vm5, %v689_v57, %v691_v15  ;;  %v730_v44 = vpop.permute.xlu2 %729 }
 0x45c   :  { %v709_v2 = vsub.f32 1.0, %v696_v24  ;;  %v710_v28 = vsub.f32 1.0, %v697_v25  ;;  %v711_v39 = vsub.f32 1.0, %v698_v38 }
 0x462   :  { %v724_v29 = vpop.permute.xlu1 %723  ;;  %v722_v30 = vpop.permute.xlu0 %721 }
 0x463   :  { %v734_v31 = vsel %vm102_vm5, %v724_v29, %v726_v26  ;;  %v733_v32 = vsel %vm102_vm5, %v722_v30, %v724_v29 }
 0x464   :  { %v747_v33 = vmul.f32 %v734_v31, %v710_v28  ;;  %v746_v35 = vmul.f32 %v733_v32, %v709_v2 }
 0x466   :  { %v2340_v36 = vadd.f32 %v747_v33, %v673_v63  ;;  %v752_v37 = vadd.f32 %v746_v35, %v672_v0 }
 0x468   :  { %821 = vrot.lane.b32.xlu0 %v2340_v36, %s1935_s29  ;;  %819 = vrot.lane.b32.xlu2 %v752_v37, %s1935_s29  ;;  %v771_v32 = vmul.f32 %v2325_v21, %v2340_v36 }
 0x46a   :  { %v693_v40 = vpop.permute.xlu1 %692  ;;  %v728_v41 = vpop.permute.xlu0 %727 }
 0x46b   :  { %v699_v42 = vsel %vm102_vm5, %v691_v15, %v693_v40  ;;  %v735_v43 = vsel %vm102_vm5, %v726_v26, %v728_v41  ;;  %v736_v47 = vsel %vm102_vm5, %v728_v41, %v730_v44  ;;  %v770_v15 = vmul.f32 %v2328_v22, %v752_v37 }
 0x46c   :  { %v712_v45 = vsub.f32 1.0, %v699_v42  ;;  %v748_v46 = vmul.f32 %v735_v43, %v711_v39 }
 0x46e   :  { %v749_v48 = vmul.f32 %v736_v47, %v712_v45  ;;  %v754_v49 = vadd.f32 %v748_v46, %v674_v1 }
 0x470   :  { %823 = vrot.lane.b32.xlu1 %v754_v49, %s1935_s29  ;;  %788 = vrot.lane.b32.xlu2 %v2280_v3, %s1935_s29  ;;  %v755_v50 = vadd.f32 %v749_v48, %v675_v4  ;;  %v783_v4 = vpop.permute.xlu2 %782  ;;  %v772_v37 = vmul.f32 %v2322_v20, %v754_v49 }
 0x472   :  { %v732_v14 = vpop.permute.xlu1 %731  ;;  %825 = vrot.lane.b32.xlu0 %v755_v50, %s1935_s29  ;;  %v695_v51 = vpop.permute.xlu0 %694  ;;  %v773_v12 = vmul.f32 %v2280_v3, %v755_v50 }
 0x473   :  { %v700_v52 = vsel %vm102_vm5, %v693_v40, %v695_v51  ;;  %v708_v53 = vsel %vm102_vm5, %v695_v51, %v685_v13  ;;  %v737_v58 = vsel %vm102_vm5, %v730_v44, %v732_v14  ;;  %v745_v59 = vsel %vm102_vm5, %v732_v14, %v722_v30 }
 0x474   :  { %v713_v54 = vsub.f32 1.0, %v700_v52  ;;  %v714_v55 = vsub.f32 1.0, %v708_v53 }
 0x476   :  { %v750_v60 = vmul.f32 %v737_v58, %v713_v54  ;;  %v751_v61 = vmul.f32 %v745_v59, %v714_v55 }
 0x478   :  { %790 = vrot.lane.b32.xlu1 %v2282_v5, %s1935_s29  ;;  %792 = vrot.lane.b32.xlu2 %v2285_v6, %s1935_s29  ;;  %v756_v63 = vadd.f32 %v750_v60, %v2287_v7  ;;  %v757_v0 = vadd.f32 %v751_v61, %v2289_v62  ;;  %v1807_v60 = vld [vmem:[#allocation2 + $0x38] sm:$0xff] }
 0x479   :  { %1372 = vmatpush.bf16.msra.mxu3 %v1807_v60  ;;  %v1846_v60 = vld [vmem:[#allocation2 + $0x170] sm:$0xff] }
 0x47a   :  { %827 = vrot.lane.b32.xlu0 %v756_v63, %s1935_s29  ;;  %v774_v1 = vmul.f32 %v2282_v5, %v756_v63  ;;  %v775_v3 = vmul.f32 %v2285_v6, %v757_v0  ;;  %v785_v7 = vpop.permute.xlu0 %784  ;;  %v787_v6 = vpop.permute.xlu1 %786 }
 0x47b   :  { %v794_v5 = vsel %vm102_vm5, %v783_v4, %v785_v7  ;;  %v795_v24 = vsel %vm102_vm5, %v785_v7, %v787_v6 }
 0x47c   :  { %v807_v18 = vsub.f32 1.0, %v794_v5  ;;  %v808_v26 = vsub.f32 1.0, %v795_v24  ;;  %v1805_v5 = vld [vmem:[#allocation2 + $0x28] sm:$0xff]  ;;  %v1803_v24 = vld [vmem:[#allocation2 + $0x18] sm:$0xff] }
 0x480   :  { %829 = vrot.lane.b32.xlu1 %v757_v0, %s1935_s29  ;;  %879 = vrot.lane.b32.xlu2 %v2294_v8, %s1935_s29 }
 0x482   :  { %881 = vrot.lane.b32.xlu0 %v2299_v9, %s1935_s29 }
 0x48a   :  { %883 = vrot.lane.b32.xlu0 %v2304_v10, %s1935_s29 }
 0x492   :  { %887 = vrot.lane.b32.xlu0 %v2306_v11, %s1935_s29 }
 0x4c2   :  { %v820_v62 = vpop.permute.xlu2 %819 }
 0x4ca   :  { %v789_v57 = vpop.permute.xlu2 %788 }
 0x4cb   :  { %v796_v25 = vsel %vm102_vm5, %v787_v6, %v789_v57 }
 0x4cc   :  { %v809_v29 = vsub.f32 1.0, %v796_v25 }
 0x4d2   :  { %v793_v41 = vpop.permute.xlu2 %792 }
 0x4d3   :  { %v806_v44 = vsel %vm102_vm5, %v793_v41, %v783_v4  ;;  %v1815_v4 = vld [vmem:[#allocation2 + $0x78] sm:$0xff] }
 0x4d4   :  { %v812_v46 = vsub.f32 1.0, %v806_v44  ;;  %1385 = vmatpush.bf16.msrb.mxu0 %v1815_v4  ;;  %v1845_v4 = vld [vmem:[#allocation2 + $0x168] sm:$0xff] }
 0x4da   :  { %v822_v34 = vpop.permute.xlu0 %821 }
 0x4db   :  { %v831_v19 = vsel %vm102_vm5, %v820_v62, %v822_v34 }
 0x4dc   :  { %v844_v13 = vmul.f32 %v831_v19, %v807_v18 }
 0x4de   :  { %v850_v23 = vadd.f32 %v844_v13, %v770_v15  ;;  %v1804_v13 = vld [vmem:[#allocation2 + $0x20] sm:$0xff] }
 0x4e0   :  { %912 = vrot.lane.b32.xlu1 %v850_v23, %s1935_s29  ;;  %v868_v0 = vmul.f32 %v2294_v8, %v850_v23 }
 0x4e2   :  { %v824_v2 = vpop.permute.xlu1 %823 }
 0x4e3   :  { %v832_v28 = vsel %vm102_vm5, %v822_v34, %v824_v2 }
 0x4e4   :  { %v845_v30 = vmul.f32 %v832_v28, %v808_v26  ;;  %v826_v31 = vpop.permute.xlu0 %825  ;;  %v1802_v28 = vld [vmem:[#allocation2 + $0x10] sm:$0xff] }
 0x4e5   :  { %v833_v22 = vsel %vm102_vm5, %v824_v2, %v826_v31  ;;  %v1583_v2 = vadd.f32 -2.5758297, %v2188_v56 }
 0x4e6   :  { %v846_v33 = vmul.f32 %v833_v22, %v809_v29  ;;  %v851_v35 = vadd.f32 %v845_v30, %v771_v32 }
 0x4e8   :  { %914 = vrot.lane.b32.xlu2 %v851_v35, %s1935_s29  ;;  %v2388_v38 = vadd.f32 %v846_v33, %v772_v37  ;;  %v1801_v33 = vld [vmem:[#allocation2 + $0x8] sm:$0xff] }
 0x4ea   :  { %v791_v39 = vpop.permute.xlu1 %790  ;;  %916 = vrot.lane.b32.xlu1 %v2388_v38, %s1935_s29 }
 0x4eb   :  { %v797_v40 = vsel %vm102_vm5, %v789_v57, %v791_v39  ;;  %v798_v20 = vsel %vm102_vm5, %v791_v39, %v793_v41  ;;  %v869_v57 = vmul.f32 %v2299_v9, %v851_v35  ;;  %v947_v9 = vmax.f32 %v1583_v2, 0.0  ;;  %v1826_v2 = vld [vmem:[#allocation2 + $0xd0] sm:$0xff] }
 0x4ec   :  { %v810_v42 = vsub.f32 1.0, %v797_v40  ;;  %v828_v43 = vpop.permute.xlu0 %827  ;;  %v811_v47 = vsub.f32 1.0, %v798_v20 }
 0x4ed   :  { %v834_v21 = vsel %vm102_vm5, %v826_v31, %v828_v43 }
 0x4ee   :  { %v847_v36 = vmul.f32 %v834_v21, %v810_v42  ;;  %v870_v42 = vmul.f32 %v2304_v10, %v2388_v38  ;;  %v1800_v10 = vld [vmem:[#allocation2] sm:$0xff]  ;;  %v1813_v38 = vld [vmem:[#allocation2 + $0x68] sm:$0xff] }
 0x4f0   :  { %885 = vrot.lane.b32.xlu2 %v2308_v16, %s1935_s29  ;;  %v853_v45 = vadd.f32 %v847_v36, %v773_v12 }
 0x4f2   :  { %v830_v48 = vpop.permute.xlu1 %829  ;;  %889 = vrot.lane.b32.xlu1 %v2310_v17, %s1935_s29  ;;  %v2401_v49 = vmul.f32 %v2308_v16, %v853_v45  ;;  %v880_v17 = vpop.permute.xlu2 %879 }
 0x4f3   :  { %v835_v50 = vsel %vm102_vm5, %v828_v43, %v830_v48  ;;  %v843_v14 = vsel %vm102_vm5, %v830_v48, %v820_v62  ;;  %v1814_v62 = vld [vmem:[#allocation2 + $0x70] sm:$0xff] }
 0x4f4   :  { %v848_v51 = vmul.f32 %v835_v50, %v811_v47  ;;  %v849_v52 = vmul.f32 %v843_v14, %v812_v46  ;;  %v882_v54 = vpop.permute.xlu0 %881  ;;  %1386 = vmatpush.bf16.msrb.mxu0 %v1814_v62  ;;  %v553_v14 = vsub.f32 0.0, %v2180_v27  ;;  %v1837_v62 = vld [vmem:[#allocation2 + $0x128] sm:$0xff] }
 0x4f5   :  { %v891_v16 = vsel %vm102_vm5, %v880_v17, %v882_v54  ;;  %v1831_v17 = vld [vmem:[#allocation2 + $0xf8] sm:$0xff] }
 0x4f6   :  { %v2405_v53 = vadd.f32 %v848_v51, %v774_v1  ;;  %v855_v12 = vadd.f32 %v849_v52, %v775_v3  ;;  %v901_v55 = vsub.f32 1.0, %v891_v16  ;;  %v1806_v1 = vld [vmem:[#allocation2 + $0x30] sm:$0xff]  ;;  %v1812_v51 = vld [vmem:[#allocation2 + $0x60] sm:$0xff]  ;;  %v554_v52 = vmul.f32 1.442695, %v553_v14  ;;  %1411 = vmatpush.bf16.msrb.mxu2 %v1831_v17 }
 0x4f7   :  { %1373 = vmatpush.bf16.msra.mxu3 %v1806_v1 }
 0x4f8   :  { %918 = vrot.lane.b32.xlu2 %v853_v45, %s1935_s29  ;;  %920 = vrot.lane.b32.xlu0 %v2405_v53, %s1935_s29  ;;  %v872_v47 = vmul.f32 %v2306_v11, %v2405_v53  ;;  %1878 = vpow2.f32 %v554_v52  ;;  %v1810_v11 = vld [vmem:[#allocation2 + $0x50] sm:$0xff]  ;;  %v1809_v53 = vld [vmem:[#allocation2 + $0x48] sm:$0xff] }
 0x4f9   :  { %1387 = vmatpush.bf16.msrb.mxu0 %v1813_v38 }
 0x4fa   :  { %922 = vrot.lane.b32.xlu1 %v855_v12, %s1935_s29  ;;  %v1811_v12 = vld [vmem:[#allocation2 + $0x58] sm:$0xff] }
 0x4fb   :  { %1374 = vmatpush.bf16.msra.mxu3 %v1805_v5 }
 0x4fc   :  { %v884_v7 = vpop.permute.xlu0 %883 }
 0x4fd   :  { %v892_v6 = vsel %vm102_vm5, %v882_v54, %v884_v7  ;;  %1388 = vmatpush.bf16.msrb.mxu0 %v1812_v51  ;;  %v1839_v54 = vld [vmem:[#allocation2 + $0x138] sm:$0xff] }
 0x4fe   :  { %v902_v18 = vsub.f32 1.0, %v892_v6  ;;  %v1879_v16 = vpop.eup %1878 }
 0x4ff   :  { %1375 = vmatpush.bf16.msra.mxu3 %v1804_v13  ;;  %v1820_v13 = vld [vmem:[#allocation2 + $0xa0] sm:$0xff] }
 0x501   :  { %1389 = vmatpush.bf16.msrb.mxu0 %v1811_v12 }
 0x503   :  { %1376 = vmatpush.bf16.msra.mxu3 %v1803_v24  ;;  %v1835_v24 = vld [vmem:[#allocation2 + $0x118] sm:$0xff] }
 0x504   :  { %v888_v25 = vpop.permute.xlu0 %887 }
 0x505   :  { %1390 = vmatpush.bf16.msrb.mxu0 %v1810_v11 }
 0x507   :  { %1377 = vmatpush.bf16.msra.mxu3 %v1802_v28  ;;  %v1834_v28 = vld [vmem:[#allocation2 + $0x110] sm:$0xff] }
 0x509   :  { %1391 = vmatpush.bf16.msrb.mxu0 %v1809_v53 }
 0x50b   :  { %1378 = vmatpush.bf16.msra.mxu3 %v1801_v33  ;;  %v1824_v33 = vld [vmem:[#allocation2 + $0xc0] sm:$0xff] }
 0x50f   :  { %1379 = vmatpush.bf16.msra.mxu3 %v1800_v10 }
 0x513   :  { %1424 = vmatpush.bf16.msrb.mxu3 %v1839_v54 }
 0x542   :  { %v915_v58 = vpop.permute.xlu2 %914 }
 0x54a   :  { %v886_v34 = vpop.permute.xlu2 %885 }
 0x54b   :  { %v893_v29 = vsel %vm102_vm5, %v884_v7, %v886_v34  ;;  %v894_v31 = vsel %vm102_vm5, %v886_v34, %v888_v25  ;;  %v1821_v7 = vld [vmem:[#allocation2 + $0xa8] sm:$0xff] }
 0x54c   :  { %v903_v22 = vsub.f32 1.0, %v893_v29  ;;  %v904_v37 = vsub.f32 1.0, %v894_v31  ;;  %v1841_v29 = vld [vmem:[#allocation2 + $0x148] sm:$0xff] }
 0x54d   :  { %v1825_v31 = vld [vmem:[#allocation2 + $0xc8] sm:$0xff] }
 0x552   :  { %v913_v59 = vpop.permute.xlu1 %912  ;;  %v919_v30 = vpop.permute.xlu2 %918 }
 0x553   :  { %v924_v61 = vsel %vm102_vm5, %v913_v59, %v915_v58  ;;  %v1847_v59 = vld [vmem:[#allocation2 + $0x178] sm:$0xff] }
 0x554   :  { %v934_v63 = vmul.f32 %v924_v61, %v901_v55  ;;  %v556_v55 = vadd.f32 1.0, %v1879_v16  ;;  %v1822_v61 = vld [vmem:[#allocation2 + $0xb0] sm:$0xff] }
 0x556   :  { %v939_v3 = vadd.f32 %v934_v63, %v868_v0  ;;  %1880 = vrcp.f32 %v556_v55  ;;  %v1830_v63 = vld [vmem:[#allocation2 + $0xf0] sm:$0xff] }
 0x557   :  { %v1838_v0 = vld [vmem:[#allocation2 + $0x130] sm:$0xff]  ;;  %1412 = vmatpush.bf16.msrb.mxu2 %v1830_v63 }
 0x558   :  { %953 = vrot.lane.b32.xlu2 %v939_v3, %s1935_s29  ;;  %1425 = vmatpush.bf16.msrb.mxu3 %v1838_v0  ;;  %v1829_v3 = vld [vmem:[#allocation2 + $0xe8] sm:$0xff] }
 0x55b   :  { %1413 = vmatpush.bf16.msrb.mxu2 %v1829_v3 }
 0x55c   :  { %v917_v19 = vpop.permute.xlu1 %916  ;;  %v1881_v1 = vpop.eup %1880  ;;  %1426 = vmatpush.bf16.msrb.mxu3 %v1837_v62 }
 0x55d   :  { %v925_v8 = vsel %vm102_vm5, %v915_v58, %v917_v19  ;;  %v926_v32 = vsel %vm102_vm5, %v917_v19, %v919_v30  ;;  %v1808_v58 = vld [vmem:[#allocation2 + $0x40] sm:$0xff]  ;;  %v558_v5 = vmul.f32 %v1881_v1, %v2180_v27  ;;  %v1827_v27 = vld [vmem:[#allocation2 + $0xd8] sm:$0xff] }
 0x55e   :  { %v935_v15 = vmul.f32 %v925_v8, %v902_v18  ;;  %v936_v39 = vmul.f32 %v926_v32, %v903_v22  ;;  %1392 = vmatpush.bf16.msrb.mxu0 %v1808_v58  ;;  %v1844_v19 = vld [vmem:[#allocation2 + $0x160] sm:$0xff]  ;;  %v1833_v32 = vld [vmem:[#allocation2 + $0x108] sm:$0xff] }
 0x55f   :  { %v1828_v8 = vld [vmem:[#allocation2 + $0xe0] sm:$0xff] }
 0x560   :  { %v940_v23 = vadd.f32 %v935_v15, %v869_v57  ;;  %v941_v45 = vadd.f32 %v936_v39, %v870_v42  ;;  %v1836_v15 = vld [vmem:[#allocation2 + $0x120] sm:$0xff]  ;;  %v1843_v57 = vld [vmem:[#allocation2 + $0x158] sm:$0xff]  ;;  %1414 = vmatpush.bf16.msrb.mxu2 %v1828_v8 }
 0x561   :  { %1427 = vmatpush.bf16.msrb.mxu3 %v1836_v15  ;;  %v1840_v22 = vld [vmem:[#allocation2 + $0x140] sm:$0xff] }
 0x562   :  { %955 = vrot.lane.b32.xlu0 %v940_v23, %s1935_s29  ;;  %1437 = vmatpush.bf16.msra.mxu0 %v1847_v59  ;;  %v1819_v23 = vld [vmem:[#allocation2 + $0x98] sm:$0xff] }
 0x564   :  { %v890_v26 = vpop.permute.xlu1 %889  ;;  %1415 = vmatpush.bf16.msrb.mxu2 %v1827_v27 }
 0x565   :  { %v895_v35 = vsel %vm102_vm5, %v888_v25, %v890_v26  ;;  %1428 = vmatpush.bf16.msrb.mxu3 %v1835_v24  ;;  %v1842_v25 = vld [vmem:[#allocation2 + $0x150] sm:$0xff] }
 0x566   :  { %v905_v43 = vsub.f32 1.0, %v895_v35  ;;  %1438 = vmatpush.bf16.msra.mxu0 %v1846_v60  ;;  %v1818_v26 = vld [vmem:[#allocation2 + $0x90] sm:$0xff]  ;;  %v1832_v35 = vld [vmem:[#allocation2 + $0x100] sm:$0xff] }
 0x568   :  { %1416 = vmatpush.bf16.msrb.mxu2 %v1826_v2 }
 0x569   :  { %1429 = vmatpush.bf16.msrb.mxu3 %v1834_v28 }
 0x56a   :  { %v921_v40 = vpop.permute.xlu0 %920  ;;  %973 = vrot.lane.b32.xlu0 %v947_v9, %s1935_s29  ;;  %1439 = vmatpush.bf16.msra.mxu0 %v1845_v4  ;;  %v1816_v9 = vld [vmem:[#allocation2 + $0x80] sm:$0xff] }
 0x56b   :  { %v927_v41 = vsel %vm102_vm5, %v919_v30, %v921_v40  ;;  %v1817_v30 = vld [vmem:[#allocation2 + $0x88] sm:$0xff] }
 0x56c   :  { %v937_v21 = vmul.f32 %v927_v41, %v904_v37  ;;  %v923_v36 = vpop.permute.xlu1 %922  ;;  %1417 = vmatpush.bf16.msrb.mxu2 %v1825_v31  ;;  %v944_v41 = vsub.f32 -2.5758297, %v2188_v56 }
 0x56d   :  { %v928_v44 = vsel %vm102_vm5, %v921_v40, %v923_v36  ;;  %1430 = vmatpush.bf16.msrb.mxu3 %v1833_v32 }
 0x56e   :  { %v938_v20 = vmul.f32 %v928_v44, %v905_v43  ;;  %v942_v46 = vadd.f32 %v937_v21, %v2401_v49  ;;  %v1823_v49 = vld [vmem:[#allocation2 + $0xb8] sm:$0xff]  ;;  %1440 = vmatpush.bf16.msra.mxu0 %v1844_v19  ;;  %v945_v43 = vmax.f32 %v944_v41, 0.0 }
 0x56f   :  { %1398 = vmatpush.bf16.msrb.mxu1 %v1823_v49  ;;  %v1867_v49 = vld [vmem:[%s2454_s5] ss:$0 sm:$0xff] }
 0x570   :  { %v1861_v48 = vpack.i.bf16 %v942_v46, %v941_v45  ;;  %v943_v50 = vadd.f32 %v938_v20, %v872_v47  ;;  %1418 = vmatpush.bf16.msrb.mxu2 %v1824_v33 }
 0x571   :  { %1431 = vmatpush.bf16.msrb.mxu3 %v1832_v35 }
 0x572   :  { %1862 = vrot.lane.b32.xlu1 %v1861_v48, %s1935_s29  ;;  %961 = vrot.lane.b32.xlu2 %v943_v50, %s1935_s29 }
 0x573   :  { %1399 = vmatpush.bf16.msrb.mxu1 %v1822_v61  ;;  %1441 = vmatpush.bf16.msra.mxu0 %v1843_v57 }
 0x577   :  { %1400 = vmatpush.bf16.msrb.mxu1 %v1821_v7  ;;  %1442 = vmatpush.bf16.msra.mxu0 %v1842_v25 }
 0x57b   :  { %1401 = vmatpush.bf16.msrb.mxu1 %v1820_v13  ;;  %1443 = vmatpush.bf16.msra.mxu0 %v1841_v29 }
 0x57f   :  { %1402 = vmatpush.bf16.msrb.mxu1 %v1819_v23  ;;  %1444 = vmatpush.bf16.msra.mxu0 %v1840_v22 }
 0x583   :  { %1403 = vmatpush.bf16.msrb.mxu1 %v1818_v26 }
 0x587   :  { %1404 = vmatpush.bf16.msrb.mxu1 %v1817_v30 }
 0x58b   :  { %1405 = vmatpush.bf16.msrb.mxu1 %v1816_v9 }
 0x5b2   :  { %v954_v6 = vpop.permute.xlu2 %953 }
 0x5b3   :  { %v976_v18 = vsel %vm102_vm5, %v558_v5, %v954_v6 }
 0x5b4   :  { %v978_v34 = vpack.c.bf16 %v976_v18, %v976_v18 }
 0x5b6   :  { %1380 = vmatmul.bf16.vlgmr.msra.gmra.mxu3 %v978_v34 }
 0x5cc   :  { %v962_v45 = vpop.permute.xlu2 %961 }
 0x5d4   :  { %v956_v37 = vpop.permute.xlu0 %955 }
 0x5d5   :  { %v963_v39 = vsel %vm102_vm5, %v954_v6, %v956_v37 }
 0x5d6   :  { %v979_v40 = vpack.c.bf16 %v963_v39, %v963_v39 }
 0x5d8   :  { %1393 = vmatmul.bf16.vlgmr.msrb.gmra.mxu0 %v979_v40 }
 0x5dc   :  { %v974_v42 = vpop.permute.xlu0 %973 }
 0x5dd   :  { %v977_v21 = vsel %vm102_vm5, %v945_v43, %v974_v42 }
 0x5de   :  { %v983_v46 = vpack.c.bf16 %v977_v21, %v977_v21 }
 0x5e4   :  { %v1863_v36 = vpop.permute.xlu1 %1862 }
 0x5e5   :  { %v1865_v44 = vunpack.i.h.bf16 %v1863_v36  ;;  %v1864_v20 = vunpack.i.l.bf16 %v1863_v36 }
 0x5e7   :  { %v964_v47 = vsel %vm102_vm5, %v956_v37, %v1864_v20  ;;  %v965_v48 = vsel %vm102_vm5, %v1864_v20, %v1865_v44  ;;  %v966_v50 = vsel %vm102_vm5, %v1865_v44, %v962_v45 }
 0x5e8   :  { %1445 = vmatmul.bf16.vlgmr.msra.gmra.mxu0 %v983_v46  ;;  %v980_v10 = vpack.c.bf16 %v964_v47, %v964_v47  ;;  %v981_v38 = vpack.c.bf16 %v965_v48, %v965_v48  ;;  %v982_v14 = vpack.c.bf16 %v966_v50, %v966_v50 }
 0x5ea   :  { %1406 = vmatmul.bf16.vlgmr.msrb.gmra.mxu1 %v980_v10  ;;  %1419 = vmatmul.bf16.vlgmr.msrb.gmra.mxu2 %v981_v38 }
 0x5eb   :  { %1432 = vmatmul.bf16.vlgmr.msrb.gmra.mxu3 %v982_v14 }
 0x639   :  { %v1381_v56 = vpop.f32.mrf.mxu3 }
 0x63a   :  { %v1382_v11 = vadd.f32 %v1867_v49, %v1381_v56 }
 0x641   :  { %v1383_v51 = vpop.f32.mrf.mxu3 }
 0x655   :  { %v1394_v52 = vpop.f32.mrf.mxu0 }
 0x656   :  { %v1395_v53 = vadd.f32 %v1394_v52, %v1382_v11 }
 0x65d   :  { %v1396_v12 = vpop.f32.mrf.mxu0 }
 0x665   :  { %v1446_v17 = vpop.f32.mrf.mxu0 }
 0x667   :  { %v1407_v54 = vpop.f32.mrf.mxu1 }
 0x668   :  { %v1408_v16 = vadd.f32 %v1407_v54, %v1395_v53 }
 0x66d   :  { %v1420_v55 = vpop.f32.mrf.mxu2  ;;  %v1448_v58 = vpop.f32.mrf.mxu0 }
 0x66e   :  { %v1421_v59 = vadd.f32 %v1420_v55, %v1408_v16  ;;  %v1433_v60 = vpop.f32.mrf.mxu3 }
 0x66f   :  { %v1409_v61 = vpop.f32.mrf.mxu1 }
 0x670   :  { %v1434_v63 = vadd.f32 %v1433_v60, %v1421_v59 }
 0x672   :  { %v1447_v0 = vadd.f32 %v1446_v17, %v1434_v63 }
 0x674   :  { %1450 = vst [vmem:[#allocation5] sm:$0xff] %v1447_v0 }
 0x675   :  { %v1422_v1 = vpop.f32.mrf.mxu2  ;;  %1461 = dma.vmem_to_hbm [thread:$0]  %s1457_s27, 128, %s1459_s8, [#allocation4]  }
 0x676   :  { %v1435_v4 = vpop.f32.mrf.mxu3 }
 0x677   :  { %1932 = dma.done.wait [#allocation4], 128  }
 0x678   :  { %1933 = vsyncadd [#allocation4], 4294967168 }
 0x679   :  { %1466 = vsyncpa [#allocation3], 1 }
 0x67a   :  { %1467 = vsyncpa [#allocation4], 1 }

</bundles_post_ra>
